<compile_context>
chip_gen: v7x
topology: tpu7x:2x2x1
jax: 0.10.0
libtpu: 0.0.40
codegen_flags: <defaults>
</compile_context>

<pallas_src>
import functools

import jax
import jax.numpy as jnp
from jax.experimental import pallas as pl
from jax.experimental.pallas import tpu as pltpu


def _lstm_text2word_kernel(*refs, T, H, L):
    """Whole forward pass in one kernel invocation (tiny shapes, batch=1).

    refs layout:
      seq_ref                     : (T, E)        bf16
      w_ih_refs[l], l=0..L-1      : (in_dim, 4H)  bf16   (in_dim=E for l=0 else H)
      w_hh_refs[l], l=0..L-1      : (H, 4H)       bf16
      w_out_ref                   : (H, K_pad)    bf16   (columns K..K_pad-1 are 0)
      b_out_ref                   : (1, K_pad)    f32    (columns K..K_pad-1 are -1e30)
      out_ref                     : (1, K_pad)    f32    log_softmax(label_space)
    """
    seq_ref = refs[0]
    w_ih_refs = refs[1:1 + L]
    w_hh_refs = refs[1 + L:1 + 2 * L]
    w_out_ref = refs[1 + 2 * L]
    b_out_ref = refs[2 + 2 * L]
    out_ref = refs[3 + 2 * L]

    x = seq_ref[...]                                   # (T, E) bf16, layer input
    lstm_last = None

    for l in range(L):
        w_ih = w_ih_refs[l][...]                       # (in_dim, 4H) bf16
        w_hh = w_hh_refs[l][...]                       # (H, 4H)      bf16

        # Hoisted input projection: all T timesteps in one MXU matmul.
        x_pre = jnp.dot(x, w_ih, preferred_element_type=jnp.float32)  # (T, 4H) f32

        h = jnp.zeros((1, H), jnp.float32)
        c = jnp.zeros((1, H), jnp.float32)
        hs = []
        for t in range(T):                             # tiny T -> static unroll
            # Serial recurrence: one fused (1,H)@(H,4H) matmul per step.
            pre = x_pre[t:t + 1, :] + jnp.dot(
                h.astype(w_hh.dtype), w_hh,
                preferred_element_type=jnp.float32)    # (1, 4H) f32

            # One sigmoid + one tanh over all 4H lanes, then static lane slices
            # (gate order [i, f, g, o] as in torch.nn.LSTM).
            sig = jax.nn.sigmoid(pre)
            th = jnp.tanh(pre)
            i_g = sig[:, 0 * H:1 * H]
            f_g = sig[:, 1 * H:2 * H]
            g_g = th[:, 2 * H:3 * H]
            o_g = sig[:, 3 * H:4 * H]

            c = f_g * c + i_g * g_g
            h = o_g * jnp.tanh(c)
            hs.append(h)

        if l < L - 1:
            # Next layer's input: (T, H), cast to bf16 for the MXU.
            x = jnp.concatenate(hs, axis=0).astype(jnp.bfloat16)
        else:
            lstm_last = hs[-1]                         # (1, H) == lstm_out[-1]

    # hidden2label: lane-dense (1,H)@(H,K_pad) + bias, then log_softmax.
    logits = (jnp.dot(lstm_last.astype(w_out_ref.dtype), w_out_ref[...],
                      preferred_element_type=jnp.float32)
              + b_out_ref[...])                        # (1, K_pad) f32
    m = jnp.max(logits, axis=1, keepdims=True)
    z = logits - m
    lse = jnp.log(jnp.sum(jnp.exp(z), axis=1, keepdims=True))
    out_ref[...] = z - lse


def lstm_text2word_forward(seq, params, labelset_size):
    """seq: (T, E) float32. Returns (1, labelset_size) log-probabilities."""
    w_ih_list, w_hh_list, w_out, b_out = params
    T, E = seq.shape
    L = len(w_ih_list)
    H = w_hh_list[0].shape[0]
    K_pad = w_out.shape[1]

    operands = [seq.astype(jnp.bfloat16)]
    operands += [w.astype(jnp.bfloat16) for w in w_ih_list]
    operands += [w.astype(jnp.bfloat16) for w in w_hh_list]
    operands += [w_out.astype(jnp.bfloat16), b_out.astype(jnp.float32)]

    kernel = functools.partial(_lstm_text2word_kernel, T=T, H=H, L=L)
    vmem = pl.BlockSpec(memory_space=pltpu.MemorySpace.VMEM)
    out_padded = pl.pallas_call(
        kernel,
        out_shape=jax.ShapeDtypeStruct((1, K_pad), jnp.float32),
        in_specs=[vmem] * len(operands),
        out_specs=vmem,
    )(*operands)
    return out_padded[:, :labelset_size]


def init_params(key, embedding_dim, hidden_dim, labelset_size, lstm_layers):
    """Deterministic synthetic parameters (PyTorch-style uniform(+-1/sqrt(H))).

    Weights are stored pre-transposed and gate-fused:
      w_ih[l]: (in_dim, 4H), w_hh[l]: (H, 4H), gate order [i, f, g, o].
      w_out  : (H, K_pad) = hidden2label.weight^T padded with zero columns.
      b_out  : (1, K_pad) = hidden2label.bias padded with -1e30 (softmax-inert).
    """
    E, H, K, L = embedding_dim, hidden_dim, labelset_size, lstm_layers
    bound = 1.0 / float(jnp.sqrt(jnp.float32(H)))
    K_pad = 128 * pl.cdiv(K, 128)
    keys = jax.random.split(key, 2 * L + 2)

    def u(k, shape):
        return jax.random.uniform(k, shape, jnp.float32, -bound, bound)

    w_ih_list, w_hh_list = [], []
    for l in range(L):
        in_dim = E if l == 0 else H
        w_ih_list.append(u(keys[2 * l], (in_dim, 4 * H)))
        w_hh_list.append(u(keys[2 * l + 1], (H, 4 * H)))

    w_out = jnp.zeros((H, K_pad), jnp.float32)
    w_out = w_out.at[:, :K].set(u(keys[2 * L], (H, K)))
    b_out = jnp.full((1, K_pad), -1e30, jnp.float32)
    b_out = b_out.at[:, :K].set(u(keys[2 * L + 1], (1, K)))
    return (w_ih_list, w_hh_list, w_out, b_out)


if __name__ == "__main__":
    # Small shapes consistent with the module's forward (batch of 1 sequence).
    embedding_dim = 16
    hidden_dim = 32          # -> 4H = 128 lanes, exactly one vreg width
    labelset_size = 10
    lstm_layers = 2
    seq_len = 8

    key = jax.random.PRNGKey(0)
    k_param, k_seq = jax.random.split(key)
    params = init_params(k_param, embedding_dim, hidden_dim, labelset_size,
                         lstm_layers)
    # Input "sequence" of T embedding vectors (PyTorch views it as (T, 1, E)).
    seq = jax.random.normal(k_seq, (seq_len, embedding_dim), jnp.float32)

    out = lstm_text2word_forward(seq, params, labelset_size)
    out = jax.block_until_ready(out)

    assert out.shape == (1, labelset_size)
    assert bool(jnp.all(jnp.isfinite(out)))
    # log_softmax sanity: probabilities over the real K labels sum to ~1
    # (padding lanes contribute exp(-1e30) ~ 0 to the denominator).
    assert jnp.allclose(jnp.sum(jnp.exp(out), axis=1), 1.0, atol=1e-3)
    print("KERNEL_OK")
</pallas_src>

<mosaic_0001>
module attributes {stable_mosaic.version = 11 : i64} {
  func.func @_lstm_text2word_kernel(%arg0: memref<8x16xbf16, #tpu.memory_space<vmem>>, %arg1: memref<16x128xbf16, #tpu.memory_space<vmem>>, %arg2: memref<32x128xbf16, #tpu.memory_space<vmem>>, %arg3: memref<32x128xbf16, #tpu.memory_space<vmem>>, %arg4: memref<32x128xbf16, #tpu.memory_space<vmem>>, %arg5: memref<32x128xbf16, #tpu.memory_space<vmem>>, %arg6: memref<1x128xf32, #tpu.memory_space<vmem>>, %arg7: memref<1x128xf32, #tpu.memory_space<vmem>>) attributes {dimension_semantics = [], scalar_prefetch = 0 : i64, scratch_operands = 0 : i64, tpu.core_type = #tpu.core_type<tc>} {
    %c0 = arith.constant 0 : index
    %c0_0 = arith.constant 0 : index
    %0 = vector.load %arg0[%c0, %c0_0] : memref<8x16xbf16, #tpu.memory_space<vmem>>, vector<8x16xbf16>
    %c0_1 = arith.constant 0 : index
    %c0_2 = arith.constant 0 : index
    %1 = vector.load %arg1[%c0_1, %c0_2] : memref<16x128xbf16, #tpu.memory_space<vmem>>, vector<16x128xbf16>
    %c0_3 = arith.constant 0 : index
    %c0_4 = arith.constant 0 : index
    %2 = vector.load %arg3[%c0_3, %c0_4] : memref<32x128xbf16, #tpu.memory_space<vmem>>, vector<32x128xbf16>
    %cst = arith.constant dense<0.000000e+00> : vector<8x128xf32>
    %3 = tpu.matmul %0, %1, %cst {dimension_numbers = #tpu.dot_dimension_numbers<[1], [0], [0], [1], [0, 0, 1, 1], [], []>} : vector<8x16xbf16>, vector<16x128xbf16>, vector<8x128xf32> -> vector<8x128xf32>
    %cst_5 = arith.constant 0.000000e+00 : f32
    %4 = vector.broadcast %cst_5 : f32 to vector<1x32xf32>
    %cst_6 = arith.constant 0.000000e+00 : f32
    %5 = vector.broadcast %cst_6 : f32 to vector<1x32xf32>
    %6 = vector.extract_strided_slice %3 {offsets = [0, 0], sizes = [1, 128], strides = [1, 1]} : vector<8x128xf32> to vector<1x128xf32>
    %7 = arith.truncf %4 : vector<1x32xf32> to vector<1x32xbf16>
    %cst_7 = arith.constant dense<0.000000e+00> : vector<1x128xf32>
    %8 = tpu.matmul %7, %2, %cst_7 {dimension_numbers = #tpu.dot_dimension_numbers<[1], [0], [0], [1], [0, 0, 1, 1], [], []>} : vector<1x32xbf16>, vector<32x128xbf16>, vector<1x128xf32> -> vector<1x128xf32>
    %9 = arith.addf %6, %8 : vector<1x128xf32>
    %10 = arith.negf %9 : vector<1x128xf32>
    %11 = math.exp %10 : vector<1x128xf32>
    %cst_8 = arith.constant 1.000000e+00 : f32
    %12 = vector.broadcast %cst_8 : f32 to vector<1x128xf32>
    %13 = arith.addf %12, %11 : vector<1x128xf32>
    %14 = arith.divf %12, %13 : vector<1x128xf32>
    %15 = math.tanh %9 : vector<1x128xf32>
    %16 = vector.extract_strided_slice %14 {offsets = [0, 0], sizes = [1, 32], strides = [1, 1]} : vector<1x128xf32> to vector<1x32xf32>
    %17 = vector.extract_strided_slice %14 {offsets = [0, 32], sizes = [1, 32], strides = [1, 1]} : vector<1x128xf32> to vector<1x32xf32>
    %18 = vector.extract_strided_slice %15 {offsets = [0, 64], sizes = [1, 32], strides = [1, 1]} : vector<1x128xf32> to vector<1x32xf32>
    %19 = vector.extract_strided_slice %14 {offsets = [0, 96], sizes = [1, 32], strides = [1, 1]} : vector<1x128xf32> to vector<1x32xf32>
    %20 = arith.mulf %17, %5 : vector<1x32xf32>
    %21 = arith.mulf %16, %18 : vector<1x32xf32>
    %22 = arith.addf %20, %21 : vector<1x32xf32>
    %23 = math.tanh %22 : vector<1x32xf32>
    %24 = arith.mulf %19, %23 : vector<1x32xf32>
    %25 = vector.extract_strided_slice %3 {offsets = [1, 0], sizes = [1, 128], strides = [1, 1]} : vector<8x128xf32> to vector<1x128xf32>
    %26 = arith.truncf %24 : vector<1x32xf32> to vector<1x32xbf16>
    %cst_9 = arith.constant dense<0.000000e+00> : vector<1x128xf32>
    %27 = tpu.matmul %26, %2, %cst_9 {dimension_numbers = #tpu.dot_dimension_numbers<[1], [0], [0], [1], [0, 0, 1, 1], [], []>} : vector<1x32xbf16>, vector<32x128xbf16>, vector<1x128xf32> -> vector<1x128xf32>
    %28 = arith.addf %25, %27 : vector<1x128xf32>
    %29 = arith.negf %28 : vector<1x128xf32>
    %30 = math.exp %29 : vector<1x128xf32>
    %cst_10 = arith.constant 1.000000e+00 : f32
    %31 = vector.broadcast %cst_10 : f32 to vector<1x128xf32>
    %32 = arith.addf %31, %30 : vector<1x128xf32>
    %33 = arith.divf %31, %32 : vector<1x128xf32>
    %34 = math.tanh %28 : vector<1x128xf32>
    %35 = vector.extract_strided_slice %33 {offsets = [0, 0], sizes = [1, 32], strides = [1, 1]} : vector<1x128xf32> to vector<1x32xf32>
    %36 = vector.extract_strided_slice %33 {offsets = [0, 32], sizes = [1, 32], strides = [1, 1]} : vector<1x128xf32> to vector<1x32xf32>
    %37 = vector.extract_strided_slice %34 {offsets = [0, 64], sizes = [1, 32], strides = [1, 1]} : vector<1x128xf32> to vector<1x32xf32>
    %38 = vector.extract_strided_slice %33 {offsets = [0, 96], sizes = [1, 32], strides = [1, 1]} : vector<1x128xf32> to vector<1x32xf32>
    %39 = arith.mulf %36, %22 : vector<1x32xf32>
    %40 = arith.mulf %35, %37 : vector<1x32xf32>
    %41 = arith.addf %39, %40 : vector<1x32xf32>
    %42 = math.tanh %41 : vector<1x32xf32>
    %43 = arith.mulf %38, %42 : vector<1x32xf32>
    %44 = vector.extract_strided_slice %3 {offsets = [2, 0], sizes = [1, 128], strides = [1, 1]} : vector<8x128xf32> to vector<1x128xf32>
    %45 = arith.truncf %43 : vector<1x32xf32> to vector<1x32xbf16>
    %cst_11 = arith.constant dense<0.000000e+00> : vector<1x128xf32>
    %46 = tpu.matmul %45, %2, %cst_11 {dimension_numbers = #tpu.dot_dimension_numbers<[1], [0], [0], [1], [0, 0, 1, 1], [], []>} : vector<1x32xbf16>, vector<32x128xbf16>, vector<1x128xf32> -> vector<1x128xf32>
    %47 = arith.addf %44, %46 : vector<1x128xf32>
    %48 = arith.negf %47 : vector<1x128xf32>
    %49 = math.exp %48 : vector<1x128xf32>
    %cst_12 = arith.constant 1.000000e+00 : f32
    %50 = vector.broadcast %cst_12 : f32 to vector<1x128xf32>
    %51 = arith.addf %50, %49 : vector<1x128xf32>
    %52 = arith.divf %50, %51 : vector<1x128xf32>
    %53 = math.tanh %47 : vector<1x128xf32>
    %54 = vector.extract_strided_slice %52 {offsets = [0, 0], sizes = [1, 32], strides = [1, 1]} : vector<1x128xf32> to vector<1x32xf32>
    %55 = vector.extract_strided_slice %52 {offsets = [0, 32], sizes = [1, 32], strides = [1, 1]} : vector<1x128xf32> to vector<1x32xf32>
    %56 = vector.extract_strided_slice %53 {offsets = [0, 64], sizes = [1, 32], strides = [1, 1]} : vector<1x128xf32> to vector<1x32xf32>
    %57 = vector.extract_strided_slice %52 {offsets = [0, 96], sizes = [1, 32], strides = [1, 1]} : vector<1x128xf32> to vector<1x32xf32>
    %58 = arith.mulf %55, %41 : vector<1x32xf32>
    %59 = arith.mulf %54, %56 : vector<1x32xf32>
    %60 = arith.addf %58, %59 : vector<1x32xf32>
    %61 = math.tanh %60 : vector<1x32xf32>
    %62 = arith.mulf %57, %61 : vector<1x32xf32>
    %63 = vector.extract_strided_slice %3 {offsets = [3, 0], sizes = [1, 128], strides = [1, 1]} : vector<8x128xf32> to vector<1x128xf32>
    %64 = arith.truncf %62 : vector<1x32xf32> to vector<1x32xbf16>
    %cst_13 = arith.constant dense<0.000000e+00> : vector<1x128xf32>
    %65 = tpu.matmul %64, %2, %cst_13 {dimension_numbers = #tpu.dot_dimension_numbers<[1], [0], [0], [1], [0, 0, 1, 1], [], []>} : vector<1x32xbf16>, vector<32x128xbf16>, vector<1x128xf32> -> vector<1x128xf32>
    %66 = arith.addf %63, %65 : vector<1x128xf32>
    %67 = arith.negf %66 : vector<1x128xf32>
    %68 = math.exp %67 : vector<1x128xf32>
    %cst_14 = arith.constant 1.000000e+00 : f32
    %69 = vector.broadcast %cst_14 : f32 to vector<1x128xf32>
    %70 = arith.addf %69, %68 : vector<1x128xf32>
    %71 = arith.divf %69, %70 : vector<1x128xf32>
    %72 = math.tanh %66 : vector<1x128xf32>
    %73 = vector.extract_strided_slice %71 {offsets = [0, 0], sizes = [1, 32], strides = [1, 1]} : vector<1x128xf32> to vector<1x32xf32>
    %74 = vector.extract_strided_slice %71 {offsets = [0, 32], sizes = [1, 32], strides = [1, 1]} : vector<1x128xf32> to vector<1x32xf32>
    %75 = vector.extract_strided_slice %72 {offsets = [0, 64], sizes = [1, 32], strides = [1, 1]} : vector<1x128xf32> to vector<1x32xf32>
    %76 = vector.extract_strided_slice %71 {offsets = [0, 96], sizes = [1, 32], strides = [1, 1]} : vector<1x128xf32> to vector<1x32xf32>
    %77 = arith.mulf %74, %60 : vector<1x32xf32>
    %78 = arith.mulf %73, %75 : vector<1x32xf32>
    %79 = arith.addf %77, %78 : vector<1x32xf32>
    %80 = math.tanh %79 : vector<1x32xf32>
    %81 = arith.mulf %76, %80 : vector<1x32xf32>
    %82 = vector.extract_strided_slice %3 {offsets = [4, 0], sizes = [1, 128], strides = [1, 1]} : vector<8x128xf32> to vector<1x128xf32>
    %83 = arith.truncf %81 : vector<1x32xf32> to vector<1x32xbf16>
    %cst_15 = arith.constant dense<0.000000e+00> : vector<1x128xf32>
    %84 = tpu.matmul %83, %2, %cst_15 {dimension_numbers = #tpu.dot_dimension_numbers<[1], [0], [0], [1], [0, 0, 1, 1], [], []>} : vector<1x32xbf16>, vector<32x128xbf16>, vector<1x128xf32> -> vector<1x128xf32>
    %85 = arith.addf %82, %84 : vector<1x128xf32>
    %86 = arith.negf %85 : vector<1x128xf32>
    %87 = math.exp %86 : vector<1x128xf32>
    %cst_16 = arith.constant 1.000000e+00 : f32
    %88 = vector.broadcast %cst_16 : f32 to vector<1x128xf32>
    %89 = arith.addf %88, %87 : vector<1x128xf32>
    %90 = arith.divf %88, %89 : vector<1x128xf32>
    %91 = math.tanh %85 : vector<1x128xf32>
    %92 = vector.extract_strided_slice %90 {offsets = [0, 0], sizes = [1, 32], strides = [1, 1]} : vector<1x128xf32> to vector<1x32xf32>
    %93 = vector.extract_strided_slice %90 {offsets = [0, 32], sizes = [1, 32], strides = [1, 1]} : vector<1x128xf32> to vector<1x32xf32>
    %94 = vector.extract_strided_slice %91 {offsets = [0, 64], sizes = [1, 32], strides = [1, 1]} : vector<1x128xf32> to vector<1x32xf32>
    %95 = vector.extract_strided_slice %90 {offsets = [0, 96], sizes = [1, 32], strides = [1, 1]} : vector<1x128xf32> to vector<1x32xf32>
    %96 = arith.mulf %93, %79 : vector<1x32xf32>
    %97 = arith.mulf %92, %94 : vector<1x32xf32>
    %98 = arith.addf %96, %97 : vector<1x32xf32>
    %99 = math.tanh %98 : vector<1x32xf32>
    %100 = arith.mulf %95, %99 : vector<1x32xf32>
    %101 = vector.extract_strided_slice %3 {offsets = [5, 0], sizes = [1, 128], strides = [1, 1]} : vector<8x128xf32> to vector<1x128xf32>
    %102 = arith.truncf %100 : vector<1x32xf32> to vector<1x32xbf16>
    %cst_17 = arith.constant dense<0.000000e+00> : vector<1x128xf32>
    %103 = tpu.matmul %102, %2, %cst_17 {dimension_numbers = #tpu.dot_dimension_numbers<[1], [0], [0], [1], [0, 0, 1, 1], [], []>} : vector<1x32xbf16>, vector<32x128xbf16>, vector<1x128xf32> -> vector<1x128xf32>
    %104 = arith.addf %101, %103 : vector<1x128xf32>
    %105 = arith.negf %104 : vector<1x128xf32>
    %106 = math.exp %105 : vector<1x128xf32>
    %cst_18 = arith.constant 1.000000e+00 : f32
    %107 = vector.broadcast %cst_18 : f32 to vector<1x128xf32>
    %108 = arith.addf %107, %106 : vector<1x128xf32>
    %109 = arith.divf %107, %108 : vector<1x128xf32>
    %110 = math.tanh %104 : vector<1x128xf32>
    %111 = vector.extract_strided_slice %109 {offsets = [0, 0], sizes = [1, 32], strides = [1, 1]} : vector<1x128xf32> to vector<1x32xf32>
    %112 = vector.extract_strided_slice %109 {offsets = [0, 32], sizes = [1, 32], strides = [1, 1]} : vector<1x128xf32> to vector<1x32xf32>
    %113 = vector.extract_strided_slice %110 {offsets = [0, 64], sizes = [1, 32], strides = [1, 1]} : vector<1x128xf32> to vector<1x32xf32>
    %114 = vector.extract_strided_slice %109 {offsets = [0, 96], sizes = [1, 32], strides = [1, 1]} : vector<1x128xf32> to vector<1x32xf32>
    %115 = arith.mulf %112, %98 : vector<1x32xf32>
    %116 = arith.mulf %111, %113 : vector<1x32xf32>
    %117 = arith.addf %115, %116 : vector<1x32xf32>
    %118 = math.tanh %117 : vector<1x32xf32>
    %119 = arith.mulf %114, %118 : vector<1x32xf32>
    %120 = vector.extract_strided_slice %3 {offsets = [6, 0], sizes = [1, 128], strides = [1, 1]} : vector<8x128xf32> to vector<1x128xf32>
    %121 = arith.truncf %119 : vector<1x32xf32> to vector<1x32xbf16>
    %cst_19 = arith.constant dense<0.000000e+00> : vector<1x128xf32>
    %122 = tpu.matmul %121, %2, %cst_19 {dimension_numbers = #tpu.dot_dimension_numbers<[1], [0], [0], [1], [0, 0, 1, 1], [], []>} : vector<1x32xbf16>, vector<32x128xbf16>, vector<1x128xf32> -> vector<1x128xf32>
    %123 = arith.addf %120, %122 : vector<1x128xf32>
    %124 = arith.negf %123 : vector<1x128xf32>
    %125 = math.exp %124 : vector<1x128xf32>
    %cst_20 = arith.constant 1.000000e+00 : f32
    %126 = vector.broadcast %cst_20 : f32 to vector<1x128xf32>
    %127 = arith.addf %126, %125 : vector<1x128xf32>
    %128 = arith.divf %126, %127 : vector<1x128xf32>
    %129 = math.tanh %123 : vector<1x128xf32>
    %130 = vector.extract_strided_slice %128 {offsets = [0, 0], sizes = [1, 32], strides = [1, 1]} : vector<1x128xf32> to vector<1x32xf32>
    %131 = vector.extract_strided_slice %128 {offsets = [0, 32], sizes = [1, 32], strides = [1, 1]} : vector<1x128xf32> to vector<1x32xf32>
    %132 = vector.extract_strided_slice %129 {offsets = [0, 64], sizes = [1, 32], strides = [1, 1]} : vector<1x128xf32> to vector<1x32xf32>
    %133 = vector.extract_strided_slice %128 {offsets = [0, 96], sizes = [1, 32], strides = [1, 1]} : vector<1x128xf32> to vector<1x32xf32>
    %134 = arith.mulf %131, %117 : vector<1x32xf32>
    %135 = arith.mulf %130, %132 : vector<1x32xf32>
    %136 = arith.addf %134, %135 : vector<1x32xf32>
    %137 = math.tanh %136 : vector<1x32xf32>
    %138 = arith.mulf %133, %137 : vector<1x32xf32>
    %139 = vector.extract_strided_slice %3 {offsets = [7, 0], sizes = [1, 128], strides = [1, 1]} : vector<8x128xf32> to vector<1x128xf32>
    %140 = arith.truncf %138 : vector<1x32xf32> to vector<1x32xbf16>
    %cst_21 = arith.constant dense<0.000000e+00> : vector<1x128xf32>
    %141 = tpu.matmul %140, %2, %cst_21 {dimension_numbers = #tpu.dot_dimension_numbers<[1], [0], [0], [1], [0, 0, 1, 1], [], []>} : vector<1x32xbf16>, vector<32x128xbf16>, vector<1x128xf32> -> vector<1x128xf32>
    %142 = arith.addf %139, %141 : vector<1x128xf32>
    %143 = arith.negf %142 : vector<1x128xf32>
    %144 = math.exp %143 : vector<1x128xf32>
    %cst_22 = arith.constant 1.000000e+00 : f32
    %145 = vector.broadcast %cst_22 : f32 to vector<1x128xf32>
    %146 = arith.addf %145, %144 : vector<1x128xf32>
    %147 = arith.divf %145, %146 : vector<1x128xf32>
    %148 = math.tanh %142 : vector<1x128xf32>
    %149 = vector.extract_strided_slice %147 {offsets = [0, 0], sizes = [1, 32], strides = [1, 1]} : vector<1x128xf32> to vector<1x32xf32>
    %150 = vector.extract_strided_slice %147 {offsets = [0, 32], sizes = [1, 32], strides = [1, 1]} : vector<1x128xf32> to vector<1x32xf32>
    %151 = vector.extract_strided_slice %148 {offsets = [0, 64], sizes = [1, 32], strides = [1, 1]} : vector<1x128xf32> to vector<1x32xf32>
    %152 = vector.extract_strided_slice %147 {offsets = [0, 96], sizes = [1, 32], strides = [1, 1]} : vector<1x128xf32> to vector<1x32xf32>
    %153 = arith.mulf %150, %136 : vector<1x32xf32>
    %154 = arith.mulf %149, %151 : vector<1x32xf32>
    %155 = arith.addf %153, %154 : vector<1x32xf32>
    %156 = math.tanh %155 : vector<1x32xf32>
    %157 = arith.mulf %152, %156 : vector<1x32xf32>
    %158 = tpu.concatenate %24, %43, %62, %81, %100, %119, %138, %157 in 0 : vector<1x32xf32>, vector<1x32xf32>, vector<1x32xf32>, vector<1x32xf32>, vector<1x32xf32>, vector<1x32xf32>, vector<1x32xf32>, vector<1x32xf32> -> vector<8x32xf32>
    %159 = arith.truncf %158 : vector<8x32xf32> to vector<8x32xbf16>
    %c0_23 = arith.constant 0 : index
    %c0_24 = arith.constant 0 : index
    %160 = vector.load %arg2[%c0_23, %c0_24] : memref<32x128xbf16, #tpu.memory_space<vmem>>, vector<32x128xbf16>
    %c0_25 = arith.constant 0 : index
    %c0_26 = arith.constant 0 : index
    %161 = vector.load %arg4[%c0_25, %c0_26] : memref<32x128xbf16, #tpu.memory_space<vmem>>, vector<32x128xbf16>
    %cst_27 = arith.constant dense<0.000000e+00> : vector<8x128xf32>
    %162 = tpu.matmul %159, %160, %cst_27 {dimension_numbers = #tpu.dot_dimension_numbers<[1], [0], [0], [1], [0, 0, 1, 1], [], []>} : vector<8x32xbf16>, vector<32x128xbf16>, vector<8x128xf32> -> vector<8x128xf32>
    %cst_28 = arith.constant 0.000000e+00 : f32
    %163 = vector.broadcast %cst_28 : f32 to vector<1x32xf32>
    %cst_29 = arith.constant 0.000000e+00 : f32
    %164 = vector.broadcast %cst_29 : f32 to vector<1x32xf32>
    %165 = vector.extract_strided_slice %162 {offsets = [0, 0], sizes = [1, 128], strides = [1, 1]} : vector<8x128xf32> to vector<1x128xf32>
    %166 = arith.truncf %163 : vector<1x32xf32> to vector<1x32xbf16>
    %cst_30 = arith.constant dense<0.000000e+00> : vector<1x128xf32>
    %167 = tpu.matmul %166, %161, %cst_30 {dimension_numbers = #tpu.dot_dimension_numbers<[1], [0], [0], [1], [0, 0, 1, 1], [], []>} : vector<1x32xbf16>, vector<32x128xbf16>, vector<1x128xf32> -> vector<1x128xf32>
    %168 = arith.addf %165, %167 : vector<1x128xf32>
    %169 = arith.negf %168 : vector<1x128xf32>
    %170 = math.exp %169 : vector<1x128xf32>
    %cst_31 = arith.constant 1.000000e+00 : f32
    %171 = vector.broadcast %cst_31 : f32 to vector<1x128xf32>
    %172 = arith.addf %171, %170 : vector<1x128xf32>
    %173 = arith.divf %171, %172 : vector<1x128xf32>
    %174 = math.tanh %168 : vector<1x128xf32>
    %175 = vector.extract_strided_slice %173 {offsets = [0, 0], sizes = [1, 32], strides = [1, 1]} : vector<1x128xf32> to vector<1x32xf32>
    %176 = vector.extract_strided_slice %173 {offsets = [0, 32], sizes = [1, 32], strides = [1, 1]} : vector<1x128xf32> to vector<1x32xf32>
    %177 = vector.extract_strided_slice %174 {offsets = [0, 64], sizes = [1, 32], strides = [1, 1]} : vector<1x128xf32> to vector<1x32xf32>
    %178 = vector.extract_strided_slice %173 {offsets = [0, 96], sizes = [1, 32], strides = [1, 1]} : vector<1x128xf32> to vector<1x32xf32>
    %179 = arith.mulf %176, %164 : vector<1x32xf32>
    %180 = arith.mulf %175, %177 : vector<1x32xf32>
    %181 = arith.addf %179, %180 : vector<1x32xf32>
    %182 = math.tanh %181 : vector<1x32xf32>
    %183 = arith.mulf %178, %182 : vector<1x32xf32>
    %184 = vector.extract_strided_slice %162 {offsets = [1, 0], sizes = [1, 128], strides = [1, 1]} : vector<8x128xf32> to vector<1x128xf32>
    %185 = arith.truncf %183 : vector<1x32xf32> to vector<1x32xbf16>
    %cst_32 = arith.constant dense<0.000000e+00> : vector<1x128xf32>
    %186 = tpu.matmul %185, %161, %cst_32 {dimension_numbers = #tpu.dot_dimension_numbers<[1], [0], [0], [1], [0, 0, 1, 1], [], []>} : vector<1x32xbf16>, vector<32x128xbf16>, vector<1x128xf32> -> vector<1x128xf32>
    %187 = arith.addf %184, %186 : vector<1x128xf32>
    %188 = arith.negf %187 : vector<1x128xf32>
    %189 = math.exp %188 : vector<1x128xf32>
    %cst_33 = arith.constant 1.000000e+00 : f32
    %190 = vector.broadcast %cst_33 : f32 to vector<1x128xf32>
    %191 = arith.addf %190, %189 : vector<1x128xf32>
    %192 = arith.divf %190, %191 : vector<1x128xf32>
    %193 = math.tanh %187 : vector<1x128xf32>
    %194 = vector.extract_strided_slice %192 {offsets = [0, 0], sizes = [1, 32], strides = [1, 1]} : vector<1x128xf32> to vector<1x32xf32>
    %195 = vector.extract_strided_slice %192 {offsets = [0, 32], sizes = [1, 32], strides = [1, 1]} : vector<1x128xf32> to vector<1x32xf32>
    %196 = vector.extract_strided_slice %193 {offsets = [0, 64], sizes = [1, 32], strides = [1, 1]} : vector<1x128xf32> to vector<1x32xf32>
    %197 = vector.extract_strided_slice %192 {offsets = [0, 96], sizes = [1, 32], strides = [1, 1]} : vector<1x128xf32> to vector<1x32xf32>
    %198 = arith.mulf %195, %181 : vector<1x32xf32>
    %199 = arith.mulf %194, %196 : vector<1x32xf32>
    %200 = arith.addf %198, %199 : vector<1x32xf32>
    %201 = math.tanh %200 : vector<1x32xf32>
    %202 = arith.mulf %197, %201 : vector<1x32xf32>
    %203 = vector.extract_strided_slice %162 {offsets = [2, 0], sizes = [1, 128], strides = [1, 1]} : vector<8x128xf32> to vector<1x128xf32>
    %204 = arith.truncf %202 : vector<1x32xf32> to vector<1x32xbf16>
    %cst_34 = arith.constant dense<0.000000e+00> : vector<1x128xf32>
    %205 = tpu.matmul %204, %161, %cst_34 {dimension_numbers = #tpu.dot_dimension_numbers<[1], [0], [0], [1], [0, 0, 1, 1], [], []>} : vector<1x32xbf16>, vector<32x128xbf16>, vector<1x128xf32> -> vector<1x128xf32>
    %206 = arith.addf %203, %205 : vector<1x128xf32>
    %207 = arith.negf %206 : vector<1x128xf32>
    %208 = math.exp %207 : vector<1x128xf32>
    %cst_35 = arith.constant 1.000000e+00 : f32
    %209 = vector.broadcast %cst_35 : f32 to vector<1x128xf32>
    %210 = arith.addf %209, %208 : vector<1x128xf32>
    %211 = arith.divf %209, %210 : vector<1x128xf32>
    %212 = math.tanh %206 : vector<1x128xf32>
    %213 = vector.extract_strided_slice %211 {offsets = [0, 0], sizes = [1, 32], strides = [1, 1]} : vector<1x128xf32> to vector<1x32xf32>
    %214 = vector.extract_strided_slice %211 {offsets = [0, 32], sizes = [1, 32], strides = [1, 1]} : vector<1x128xf32> to vector<1x32xf32>
    %215 = vector.extract_strided_slice %212 {offsets = [0, 64], sizes = [1, 32], strides = [1, 1]} : vector<1x128xf32> to vector<1x32xf32>
    %216 = vector.extract_strided_slice %211 {offsets = [0, 96], sizes = [1, 32], strides = [1, 1]} : vector<1x128xf32> to vector<1x32xf32>
    %217 = arith.mulf %214, %200 : vector<1x32xf32>
    %218 = arith.mulf %213, %215 : vector<1x32xf32>
    %219 = arith.addf %217, %218 : vector<1x32xf32>
    %220 = math.tanh %219 : vector<1x32xf32>
    %221 = arith.mulf %216, %220 : vector<1x32xf32>
    %222 = vector.extract_strided_slice %162 {offsets = [3, 0], sizes = [1, 128], strides = [1, 1]} : vector<8x128xf32> to vector<1x128xf32>
    %223 = arith.truncf %221 : vector<1x32xf32> to vector<1x32xbf16>
    %cst_36 = arith.constant dense<0.000000e+00> : vector<1x128xf32>
    %224 = tpu.matmul %223, %161, %cst_36 {dimension_numbers = #tpu.dot_dimension_numbers<[1], [0], [0], [1], [0, 0, 1, 1], [], []>} : vector<1x32xbf16>, vector<32x128xbf16>, vector<1x128xf32> -> vector<1x128xf32>
    %225 = arith.addf %222, %224 : vector<1x128xf32>
    %226 = arith.negf %225 : vector<1x128xf32>
    %227 = math.exp %226 : vector<1x128xf32>
    %cst_37 = arith.constant 1.000000e+00 : f32
    %228 = vector.broadcast %cst_37 : f32 to vector<1x128xf32>
    %229 = arith.addf %228, %227 : vector<1x128xf32>
    %230 = arith.divf %228, %229 : vector<1x128xf32>
    %231 = math.tanh %225 : vector<1x128xf32>
    %232 = vector.extract_strided_slice %230 {offsets = [0, 0], sizes = [1, 32], strides = [1, 1]} : vector<1x128xf32> to vector<1x32xf32>
    %233 = vector.extract_strided_slice %230 {offsets = [0, 32], sizes = [1, 32], strides = [1, 1]} : vector<1x128xf32> to vector<1x32xf32>
    %234 = vector.extract_strided_slice %231 {offsets = [0, 64], sizes = [1, 32], strides = [1, 1]} : vector<1x128xf32> to vector<1x32xf32>
    %235 = vector.extract_strided_slice %230 {offsets = [0, 96], sizes = [1, 32], strides = [1, 1]} : vector<1x128xf32> to vector<1x32xf32>
    %236 = arith.mulf %233, %219 : vector<1x32xf32>
    %237 = arith.mulf %232, %234 : vector<1x32xf32>
    %238 = arith.addf %236, %237 : vector<1x32xf32>
    %239 = math.tanh %238 : vector<1x32xf32>
    %240 = arith.mulf %235, %239 : vector<1x32xf32>
    %241 = vector.extract_strided_slice %162 {offsets = [4, 0], sizes = [1, 128], strides = [1, 1]} : vector<8x128xf32> to vector<1x128xf32>
    %242 = arith.truncf %240 : vector<1x32xf32> to vector<1x32xbf16>
    %cst_38 = arith.constant dense<0.000000e+00> : vector<1x128xf32>
    %243 = tpu.matmul %242, %161, %cst_38 {dimension_numbers = #tpu.dot_dimension_numbers<[1], [0], [0], [1], [0, 0, 1, 1], [], []>} : vector<1x32xbf16>, vector<32x128xbf16>, vector<1x128xf32> -> vector<1x128xf32>
    %244 = arith.addf %241, %243 : vector<1x128xf32>
    %245 = arith.negf %244 : vector<1x128xf32>
    %246 = math.exp %245 : vector<1x128xf32>
    %cst_39 = arith.constant 1.000000e+00 : f32
    %247 = vector.broadcast %cst_39 : f32 to vector<1x128xf32>
    %248 = arith.addf %247, %246 : vector<1x128xf32>
    %249 = arith.divf %247, %248 : vector<1x128xf32>
    %250 = math.tanh %244 : vector<1x128xf32>
    %251 = vector.extract_strided_slice %249 {offsets = [0, 0], sizes = [1, 32], strides = [1, 1]} : vector<1x128xf32> to vector<1x32xf32>
    %252 = vector.extract_strided_slice %249 {offsets = [0, 32], sizes = [1, 32], strides = [1, 1]} : vector<1x128xf32> to vector<1x32xf32>
    %253 = vector.extract_strided_slice %250 {offsets = [0, 64], sizes = [1, 32], strides = [1, 1]} : vector<1x128xf32> to vector<1x32xf32>
    %254 = vector.extract_strided_slice %249 {offsets = [0, 96], sizes = [1, 32], strides = [1, 1]} : vector<1x128xf32> to vector<1x32xf32>
    %255 = arith.mulf %252, %238 : vector<1x32xf32>
    %256 = arith.mulf %251, %253 : vector<1x32xf32>
    %257 = arith.addf %255, %256 : vector<1x32xf32>
    %258 = math.tanh %257 : vector<1x32xf32>
    %259 = arith.mulf %254, %258 : vector<1x32xf32>
    %260 = vector.extract_strided_slice %162 {offsets = [5, 0], sizes = [1, 128], strides = [1, 1]} : vector<8x128xf32> to vector<1x128xf32>
    %261 = arith.truncf %259 : vector<1x32xf32> to vector<1x32xbf16>
    %cst_40 = arith.constant dense<0.000000e+00> : vector<1x128xf32>
    %262 = tpu.matmul %261, %161, %cst_40 {dimension_numbers = #tpu.dot_dimension_numbers<[1], [0], [0], [1], [0, 0, 1, 1], [], []>} : vector<1x32xbf16>, vector<32x128xbf16>, vector<1x128xf32> -> vector<1x128xf32>
    %263 = arith.addf %260, %262 : vector<1x128xf32>
    %264 = arith.negf %263 : vector<1x128xf32>
    %265 = math.exp %264 : vector<1x128xf32>
    %cst_41 = arith.constant 1.000000e+00 : f32
    %266 = vector.broadcast %cst_41 : f32 to vector<1x128xf32>
    %267 = arith.addf %266, %265 : vector<1x128xf32>
    %268 = arith.divf %266, %267 : vector<1x128xf32>
    %269 = math.tanh %263 : vector<1x128xf32>
    %270 = vector.extract_strided_slice %268 {offsets = [0, 0], sizes = [1, 32], strides = [1, 1]} : vector<1x128xf32> to vector<1x32xf32>
    %271 = vector.extract_strided_slice %268 {offsets = [0, 32], sizes = [1, 32], strides = [1, 1]} : vector<1x128xf32> to vector<1x32xf32>
    %272 = vector.extract_strided_slice %269 {offsets = [0, 64], sizes = [1, 32], strides = [1, 1]} : vector<1x128xf32> to vector<1x32xf32>
    %273 = vector.extract_strided_slice %268 {offsets = [0, 96], sizes = [1, 32], strides = [1, 1]} : vector<1x128xf32> to vector<1x32xf32>
    %274 = arith.mulf %271, %257 : vector<1x32xf32>
    %275 = arith.mulf %270, %272 : vector<1x32xf32>
    %276 = arith.addf %274, %275 : vector<1x32xf32>
    %277 = math.tanh %276 : vector<1x32xf32>
    %278 = arith.mulf %273, %277 : vector<1x32xf32>
    %279 = vector.extract_strided_slice %162 {offsets = [6, 0], sizes = [1, 128], strides = [1, 1]} : vector<8x128xf32> to vector<1x128xf32>
    %280 = arith.truncf %278 : vector<1x32xf32> to vector<1x32xbf16>
    %cst_42 = arith.constant dense<0.000000e+00> : vector<1x128xf32>
    %281 = tpu.matmul %280, %161, %cst_42 {dimension_numbers = #tpu.dot_dimension_numbers<[1], [0], [0], [1], [0, 0, 1, 1], [], []>} : vector<1x32xbf16>, vector<32x128xbf16>, vector<1x128xf32> -> vector<1x128xf32>
    %282 = arith.addf %279, %281 : vector<1x128xf32>
    %283 = arith.negf %282 : vector<1x128xf32>
    %284 = math.exp %283 : vector<1x128xf32>
    %cst_43 = arith.constant 1.000000e+00 : f32
    %285 = vector.broadcast %cst_43 : f32 to vector<1x128xf32>
    %286 = arith.addf %285, %284 : vector<1x128xf32>
    %287 = arith.divf %285, %286 : vector<1x128xf32>
    %288 = math.tanh %282 : vector<1x128xf32>
    %289 = vector.extract_strided_slice %287 {offsets = [0, 0], sizes = [1, 32], strides = [1, 1]} : vector<1x128xf32> to vector<1x32xf32>
    %290 = vector.extract_strided_slice %287 {offsets = [0, 32], sizes = [1, 32], strides = [1, 1]} : vector<1x128xf32> to vector<1x32xf32>
    %291 = vector.extract_strided_slice %288 {offsets = [0, 64], sizes = [1, 32], strides = [1, 1]} : vector<1x128xf32> to vector<1x32xf32>
    %292 = vector.extract_strided_slice %287 {offsets = [0, 96], sizes = [1, 32], strides = [1, 1]} : vector<1x128xf32> to vector<1x32xf32>
    %293 = arith.mulf %290, %276 : vector<1x32xf32>
    %294 = arith.mulf %289, %291 : vector<1x32xf32>
    %295 = arith.addf %293, %294 : vector<1x32xf32>
    %296 = math.tanh %295 : vector<1x32xf32>
    %297 = arith.mulf %292, %296 : vector<1x32xf32>
    %298 = vector.extract_strided_slice %162 {offsets = [7, 0], sizes = [1, 128], strides = [1, 1]} : vector<8x128xf32> to vector<1x128xf32>
    %299 = arith.truncf %297 : vector<1x32xf32> to vector<1x32xbf16>
    %cst_44 = arith.constant dense<0.000000e+00> : vector<1x128xf32>
    %300 = tpu.matmul %299, %161, %cst_44 {dimension_numbers = #tpu.dot_dimension_numbers<[1], [0], [0], [1], [0, 0, 1, 1], [], []>} : vector<1x32xbf16>, vector<32x128xbf16>, vector<1x128xf32> -> vector<1x128xf32>
    %301 = arith.addf %298, %300 : vector<1x128xf32>
    %302 = arith.negf %301 : vector<1x128xf32>
    %303 = math.exp %302 : vector<1x128xf32>
    %cst_45 = arith.constant 1.000000e+00 : f32
    %304 = vector.broadcast %cst_45 : f32 to vector<1x128xf32>
    %305 = arith.addf %304, %303 : vector<1x128xf32>
    %306 = arith.divf %304, %305 : vector<1x128xf32>
    %307 = math.tanh %301 : vector<1x128xf32>
    %308 = vector.extract_strided_slice %306 {offsets = [0, 0], sizes = [1, 32], strides = [1, 1]} : vector<1x128xf32> to vector<1x32xf32>
    %309 = vector.extract_strided_slice %306 {offsets = [0, 32], sizes = [1, 32], strides = [1, 1]} : vector<1x128xf32> to vector<1x32xf32>
    %310 = vector.extract_strided_slice %307 {offsets = [0, 64], sizes = [1, 32], strides = [1, 1]} : vector<1x128xf32> to vector<1x32xf32>
    %311 = vector.extract_strided_slice %306 {offsets = [0, 96], sizes = [1, 32], strides = [1, 1]} : vector<1x128xf32> to vector<1x32xf32>
    %312 = arith.mulf %309, %295 : vector<1x32xf32>
    %313 = arith.mulf %308, %310 : vector<1x32xf32>
    %314 = arith.addf %312, %313 : vector<1x32xf32>
    %315 = math.tanh %314 : vector<1x32xf32>
    %316 = arith.mulf %311, %315 : vector<1x32xf32>
    %317 = arith.truncf %316 : vector<1x32xf32> to vector<1x32xbf16>
    %c0_46 = arith.constant 0 : index
    %c0_47 = arith.constant 0 : index
    %318 = vector.load %arg5[%c0_46, %c0_47] : memref<32x128xbf16, #tpu.memory_space<vmem>>, vector<32x128xbf16>
    %cst_48 = arith.constant dense<0.000000e+00> : vector<1x128xf32>
    %319 = tpu.matmul %317, %318, %cst_48 {dimension_numbers = #tpu.dot_dimension_numbers<[1], [0], [0], [1], [0, 0, 1, 1], [], []>} : vector<1x32xbf16>, vector<32x128xbf16>, vector<1x128xf32> -> vector<1x128xf32>
    %c0_49 = arith.constant 0 : index
    %c0_50 = arith.constant 0 : index
    %320 = vector.load %arg6[%c0_49, %c0_50] : memref<1x128xf32, #tpu.memory_space<vmem>>, vector<1x128xf32>
    %321 = arith.addf %319, %320 : vector<1x128xf32>
    %cst_51 = arith.constant dense<0xFF800000> : vector<1xf32>
    %322 = vector.multi_reduction <maximumf>, %321, %cst_51 [1] : vector<1x128xf32> to vector<1xf32>
    %323 = vector.shape_cast %322 : vector<1xf32> to vector<1x1xf32>
    %324 = vector.broadcast %323 : vector<1x1xf32> to vector<1x128xf32>
    %325 = arith.subf %321, %324 : vector<1x128xf32>
    %326 = math.exp %325 : vector<1x128xf32>
    %cst_52 = arith.constant dense<0.000000e+00> : vector<1xf32>
    %327 = vector.multi_reduction <add>, %326, %cst_52 [1] : vector<1x128xf32> to vector<1xf32>
    %328 = vector.shape_cast %327 : vector<1xf32> to vector<1x1xf32>
    %329 = math.log %328 : vector<1x1xf32>
    %330 = vector.broadcast %329 : vector<1x1xf32> to vector<1x128xf32>
    %331 = arith.subf %325, %330 : vector<1x128xf32>
    %c0_53 = arith.constant 0 : index
    %c0_54 = arith.constant 0 : index
    %332 = vector.load %arg7[%c0_53, %c0_54] : memref<1x128xf32, #tpu.memory_space<vmem>>, vector<1x128xf32>
    tpu.vector_store %arg7[%c0_53, %c0_54], %331 {strides = array<i32>} : memref<1x128xf32, #tpu.memory_space<vmem>>, vector<1x128xf32>,
    return
  }
}

</mosaic_0001>

<bundles_post_ra>
// kernel: tpu_custom_call.1
= control target key start
LH: loop header
LB: loop body
LE: loop exit
PB: predicated region body
PF: predicated region fallthrough
CT: control target
= control target key end

     0   :  { %12 = vsyncpa [#allocation3], 0  ;;  %s2512_s0 = inlined_call_operand.hbm [shape: bf16[8,16], index: 0, kind: input, shape index: {}]   ;;  %s2513_s1 = inlined_call_operand.hbm [shape: bf16[16,128], index: 1, kind: input, shape index: {}]   ;;  %s2514_s2 = inlined_call_operand.hbm [shape: bf16[32,128], index: 2, kind: input, shape index: {}]   ;;  %s2515_s3 = inlined_call_operand.hbm [shape: bf16[32,128], index: 3, kind: input, shape index: {}]   ;;  %s2516_s4 = inlined_call_operand.hbm [shape: bf16[32,128], index: 4, kind: input, shape index: {}]   ;;  %s2517_s5 = inlined_call_operand.vmem [shape: bf16[32,128], index: 5, kind: input, shape index: {}]   ;;  %s2518_s6 = inlined_call_operand.vmem [shape: f32[1,128], index: 6, kind: input, shape index: {}]   ;;  %s2519_s7 = inlined_call_operand.hbm [shape: f32[1,128], index: 7, kind: output, shape index: {}]  }
   0x1   :  { %13 = vsyncpa [#allocation6], 0 }
   0x2   :  { %14 = vsyncpa [#allocation9], 0 }
   0x3   :  { %15 = vsyncpa [#allocation4], 0  ;;  %s2142_s24 = smov [#allocation5]   ;;  %s2002_s28 = scalar_lea.hbm %s2513_s1, 128 }
   0x4   :  { %s31_s25 = sshll.u32 %s2142_s24, 4  ;;  %p2003_p0 = scmp.ne.s32.totalorder %s2513_s1, %s2002_s28  ;;  %s32_s25 = int_to_ptr.vmem [resolvable:$true] %s31_s25 }
   0x5   :  { %p2006_p1 = scmp.lt.u32.totalorder %s2002_s28, %s2513_s1 }
   0x7   :  { %p2008_p2 = pnand %p2006_p1, %p2003_p0 }
   0x9   :  { %2011 = shalt.err (!%p2008_p2)
}
   0xa   :  { %s2012_s10 = scalar_lea.vmem %s32_s25, 128  ;;  %p2017_p4 = scmp.lt.s32.totalorder %s32_s25, %s32_s25 }
   0xb   :  { %p2013_p3 = scmp.ne.s32.totalorder %s32_s25, %s2012_s10  ;;  %p2018_p5 = scmp.lt.s32.totalorder %s2012_s10, %s2012_s10 }
   0xd   :  { %p2019_p6 = por %p2018_p5, %p2017_p4 }
   0xf   :  { %p2020_p7 = pnand %p2019_p6, %p2013_p3 }
  0x11   :  { %2023 = shalt.err (!%p2020_p7)
}
  0x12   :  { %s2143_s11 = smov 64   ;;  %s2144_s12 = smov 4  }
  0x13   :  { %37 = dma.hbm_to_vmem [thread:$0]  %s2513_s1, 128, %s32_s25, [#allocation6], %s2143_s11, %s2143_s11, %s2144_s12  }
  0x14   :  { %s2145_s15 = smov [#allocation8]   ;;  %s2146_s17 = smov [#allocation2]  }
  0x15   :  { %s55_s16 = sshll.u32 %s2145_s15, 4  ;;  %s22_s18 = sshll.u32 %s2146_s17, 4  ;;  %s56_s16 = int_to_ptr.vmem [resolvable:$true] %s55_s16  ;;  %s23_s18 = int_to_ptr.vmem [resolvable:$true] %s22_s18 }
  0x16   :  { %s2024_s21 = scalar_lea.hbm %s2515_s3, 256 }
  0x17   :  { %p2025_p8 = scmp.ne.s32.totalorder %s2515_s3, %s2024_s21  ;;  %p2028_p9 = scmp.lt.u32.totalorder %s2024_s21, %s2515_s3 }
  0x19   :  { %p2030_p10 = pnand %p2028_p9, %p2025_p8 }
  0x1b   :  { %2033 = shalt.err (!%p2030_p10)
}
  0x1c   :  { %s2034_s1 = scalar_lea.vmem %s56_s16, 256  ;;  %p2039_p12 = scmp.lt.s32.totalorder %s56_s16, %s56_s16 }
  0x1d   :  { %p2035_p11 = scmp.ne.s32.totalorder %s56_s16, %s2034_s1  ;;  %p2040_p13 = scmp.lt.s32.totalorder %s2034_s1, %s2034_s1 }
  0x1f   :  { %p2041_p0 = por %p2040_p13, %p2039_p12 }
  0x21   :  { %p2042_p1 = pnand %p2041_p0, %p2035_p11 }
  0x23   :  { %2045 = shalt.err (!%p2042_p1)
}
  0x24   :  { %61 = dma.hbm_to_vmem [thread:$0]  %s2515_s3, 256, %s56_s16, [#allocation9], %s2143_s11, %s2143_s11, %s2144_s12  }
  0x25   :  { %s2046_s30 = scalar_lea.hbm %s2512_s0, 64 }
  0x26   :  { %p2047_p2 = scmp.ne.s32.totalorder %s2512_s0, %s2046_s30  ;;  %p2050_p3 = scmp.lt.u32.totalorder %s2046_s30, %s2512_s0 }
  0x28   :  { %p2052_p4 = pnand %p2050_p3, %p2047_p2 }
  0x2a   :  { %2055 = shalt.err (!%p2052_p4)
}
  0x2b   :  { %s2056_s14 = scalar_lea.vmem %s23_s18, 64  ;;  %p2061_p6 = scmp.lt.s32.totalorder %s23_s18, %s23_s18 }
  0x2c   :  { %p2057_p5 = scmp.ne.s32.totalorder %s23_s18, %s2056_s14  ;;  %p2062_p7 = scmp.lt.s32.totalorder %s2056_s14, %s2056_s14 }
  0x2e   :  { %p2063_p8 = por %p2062_p7, %p2061_p6 }
  0x30   :  { %p2064_p9 = pnand %p2063_p8, %p2057_p5 }
  0x32   :  { %2067 = shalt.err (!%p2064_p9)
}
  0x33   :  { %25 = dma.hbm_to_vmem [thread:$0]  %s2512_s0, 64, %s23_s18, [#allocation3]  }
  0x34   :  { %s2147_s16 = smov [#allocation7]   ;;  %s2148_s19 = smov [#allocation10]  }
  0x35   :  { %s43_s17 = sshll.u32 %s2147_s16, 4  ;;  %s67_s20 = sshll.u32 %s2148_s19, 4  ;;  %s44_s17 = int_to_ptr.vmem [resolvable:$true] %s43_s17  ;;  %s68_s20 = int_to_ptr.vmem [resolvable:$true] %s67_s20 }
  0x36   :  { %s2068_s23 = scalar_lea.hbm %s2514_s2, 256 }
  0x37   :  { %p2069_p10 = scmp.ne.s32.totalorder %s2514_s2, %s2068_s23  ;;  %p2072_p11 = scmp.lt.u32.totalorder %s2068_s23, %s2514_s2 }
  0x39   :  { %p2074_p12 = pnand %p2072_p11, %p2069_p10 }
  0x3b   :  { %2077 = shalt.err (!%p2074_p12)
}
  0x3c   :  { %s2078_s0 = scalar_lea.vmem %s44_s17, 256  ;;  %p2083_p0 = scmp.lt.s32.totalorder %s44_s17, %s44_s17 }
  0x3d   :  { %p2079_p13 = scmp.ne.s32.totalorder %s44_s17, %s2078_s0  ;;  %p2084_p1 = scmp.lt.s32.totalorder %s2078_s0, %s2078_s0 }
  0x3f   :  { %p2085_p2 = por %p2084_p1, %p2083_p0 }
  0x41   :  { %p2086_p3 = pnand %p2085_p2, %p2079_p13 }
  0x43   :  { %2089 = shalt.err (!%p2086_p3)
}
  0x44   :  { %49 = dma.hbm_to_vmem [thread:$0]  %s2514_s2, 256, %s44_s17, [#allocation6], %s2143_s11, %s2143_s11, %s2144_s12  }
  0x45   :  { %s2090_s30 = scalar_lea.hbm %s2516_s4, 256 }
  0x46   :  { %p2091_p4 = scmp.ne.s32.totalorder %s2516_s4, %s2090_s30  ;;  %p2094_p5 = scmp.lt.u32.totalorder %s2090_s30, %s2516_s4 }
  0x48   :  { %p2096_p6 = pnand %p2094_p5, %p2091_p4 }
  0x4a   :  { %2099 = shalt.err (!%p2096_p6)
}
  0x4b   :  { %s2100_s14 = scalar_lea.vmem %s68_s20, 256  ;;  %p2105_p8 = scmp.lt.s32.totalorder %s68_s20, %s68_s20 }
  0x4c   :  { %p2101_p7 = scmp.ne.s32.totalorder %s68_s20, %s2100_s14  ;;  %p2106_p9 = scmp.lt.s32.totalorder %s2100_s14, %s2100_s14 }
  0x4e   :  { %p2107_p10 = por %p2106_p9, %p2105_p8 }
  0x50   :  { %p2108_p11 = pnand %p2107_p10, %p2101_p7 }
  0x52   :  { %2111 = shalt.err (!%p2108_p11)
}
  0x53   :  { %73 = dma.hbm_to_vmem [thread:$0]  %s2516_s4, 256, %s68_s20, [#allocation9], %s2143_s11, %s2143_s11, %s2144_s12  }
  0x54   :  { %2134 = dma.done.wait [#allocation3], 64  }
  0x55   :  { %2135 = vsyncadd [#allocation3], 4294967232 }
  0x56   :  { %2136 = dma.done.wait [#allocation6], 384  }
  0x57   :  { %2137 = vsyncadd [#allocation6], 4294966912 }
  0x58   :  { %2138 = dma.done.wait [#allocation9], 512  }
  0x59   :  { %2139 = vsyncadd [#allocation9], 4294966784  ;;  %v2149_v0 = vmov 0.0   ;;  %vm2150_vm0 = vmmov 0   ;;  %v2272_v1 = vld [vmem:[#allocation8] sm:$0xff]   ;;  %v1862_v2 = vld [vmem:[#allocation5] sm:$0xff]  }
  0x5a   :  { %1705 = vmatprep.subr.bf16.mxu1 %v2149_v0  ;;  %1699 = vmatprep.subr.bf16.mxu0 %v2149_v0  ;;  %vm107_vm1 = vcmask 130048   ;;  %v94_v3 = vld [vmem:[#allocation2] sm:$0xf]  ;;  %v2276_v4 = vld [vmem:[#allocation8 + $0x8] sm:$0xff]   ;;  %v2151_v5 = vmov 0   ;;  %s2152_s4 = smov 32  }
  0x5b   :  { %1701 = vmatprep.mubr.msk.bf16.mxu0 %vm2150_vm0, %v2149_v0  ;;  %1709 = vmatprep.mubr.msk.bf16.mxu1 %vm2150_vm0, %v2149_v0  ;;  %vm163_vm2 = vcmask 261120   ;;  %vm789_vm3 = vcmask 1040384   ;;  %vm791_vm4 = vcmask 1041408   ;;  %vm793_vm5 = vcmask 1042432  }
  0x5c   :  { %1706 = vmatpush3.bf16.msra.mxu1 %v2272_v1  ;;  %1700 = vmatpush3.bf16.msra.mxu0 %v1862_v2  ;;  %vm795_vm6 = vcmask 1043456   ;;  %vm797_vm7 = vcmask 1044480   ;;  %vm799_vm8 = vcmask 1045504   ;;  %vm801_vm9 = vcmask 1046528  }
  0x5d   :  { %1707 = vmatprep.subr.bf16.mxu1 %v2149_v0  ;;  %1713 = vmatprep.subr.bf16.mxu0 %v2149_v0 }
  0x5f   :  { %1702 = vmatmul.mubr.msk.bf16.vlgmr.msra.gmra.mrb[0].mxu0 %vm107_vm1, %v94_v3 }
  0x60   :  { %1708 = vmatpush3.bf16.msra.mxu1 %v2276_v4  ;;  %1714 = vmatpush3.bf16.msra.mxu0 %v2272_v1 }
  0x61   :  { %1717 = vmatprep.mubr.msk.bf16.mxu0 %vm2150_vm0, %v2149_v0  ;;  %1715 = vmatprep.subr.bf16.mxu0 %v2149_v0 }
  0x62   :  { %1721 = vmatprep.subr.bf16.mxu1 %v2149_v0 }
  0x63   :  { %1710 = vmatmul.mubr.bf16.vlgmr.msra.gmra.mrb[0].mxu1 %v2151_v5 }
  0x64   :  { %1722 = vmatpush3.bf16.msra.mxu1 %v2272_v1  ;;  %1725 = vmatprep.mubr.msk.bf16.mxu1 %vm2150_vm0, %v2149_v0 }
  0x65   :  { %1716 = vmatpush3.bf16.msra.mxu0 %v2276_v4  ;;  %1723 = vmatprep.subr.bf16.mxu1 %v2149_v0 }
  0x66   :  { %1729 = vmatprep.subr.bf16.mxu0 %v2149_v0 }
  0x68   :  { %1724 = vmatpush3.bf16.msra.mxu1 %v2276_v4 }
  0x69   :  { %1737 = vmatprep.subr.bf16.mxu1 %v2149_v0 }
 0x132   :  { %v2294_v6 = vpop.f32.mrb[0].mxu0 }
 0x133   :  { %v1703_v7 = vpop.f32.mrb[1].mxu0 }
 0x134   :  { %v148_v8 = vpop.f32.mrb[2].mxu0 }
 0x135   :  { %v1704_v9 = vpop.f32.mrb[3].mxu0 }
 0x136   :  { %v201_v10 = vpop.f32.mrb[0].mxu1 }
 0x137   :  { %v207_v11 = vadd.f32 %v201_v10, %v2294_v6  ;;  %v1711_v12 = vpop.f32.mrb[1].mxu1 }
 0x138   :  { %v204_v13 = vpop.f32.mrb[2].mxu1 }
 0x139   :  { %v1712_v14 = vpop.f32.mrb[3].mxu1  ;;  %1870 = vtanh.f32 %v207_v11  ;;  %v1605_v16 = vmul.f32 -1.442695, %v207_v11 }
 0x13b   :  { %1872 = vpow2.f32 %v1605_v16 }
 0x143   :  { %v1871_v15 = vpop.eup %1870 }
 0x144   :  { %217 = vrot.lane.b32.xlu0 %v1871_v15, %s2143_s11 }
 0x145   :  { %v1873_v17 = vpop.eup %1872 }
 0x146   :  { %v211_v18 = vadd.f32 1.0, %v1873_v17 }
 0x148   :  { %1874 = vrcp.f32 %v211_v18 }
 0x152   :  { %v1875_v19 = vpop.eup %1874 }
 0x153   :  { %v215_v22 = vmul.f32 0.0, %v1875_v19 }
 0x1b6   :  { %v218_v20 = vpop.permute.xlu0 %217 }
 0x1b7   :  { %v220_v21 = vmul.f32 %v1875_v19, %v218_v20 }
 0x1b9   :  { %222 = vrot.lane.b32.xlu0 %v220_v21, %s2152_s4 }
 0x22b   :  { %v223_v23 = vpop.permute.xlu0 %222 }
 0x22c   :  { %v225_v24 = vadd.f32 %v223_v23, %v215_v22 }
 0x22e   :  { %1876 = vtanh.f32 %v225_v24  ;;  %v291_v43 = vrot.slane %v225_v24, 7 }
 0x238   :  { %v1877_v25 = vpop.eup %1876 }
 0x239   :  { %228 = vrot.lane.b32.xlu1 %v1877_v25, %s2143_s11 }
 0x2ab   :  { %v229_v26 = vpop.permute.xlu1 %228 }
 0x2ac   :  { %v2300_v27 = vmul.f32 %v1875_v19, %v229_v26 }
 0x2ae   :  { %v232_v28 = vpack.c.bf16 %v2300_v27, %v2300_v27 }
 0x2b0   :  { %234 = vrot.lane.b32.xlu1 %v232_v28, %s2152_s4 }
 0x322   :  { %v235_v29 = vpop.permute.xlu1 %234 }
 0x323   :  { %1718 = vmatmul.mubr.msk.bf16.vlgmr.msra.gmra.mrb[4].mxu0 %vm163_vm2, %v235_v29 }
 0x324   :  { %1730 = vmatpush3.bf16.msra.mxu0 %v2272_v1  ;;  %1733 = vmatprep.mubr.msk.bf16.mxu0 %vm2150_vm0, %v2149_v0 }
 0x325   :  { %1731 = vmatprep.subr.bf16.mxu0 %v2149_v0 }
 0x328   :  { %1732 = vmatpush3.bf16.msra.mxu0 %v2276_v4 }
 0x329   :  { %1745 = vmatprep.subr.bf16.mxu0 %v2149_v0 }
 0x3f6   :  { %v273_v30 = vpop.f32.mrb[4].mxu0 }
 0x3f7   :  { %v280_v31 = vrot.slane %v273_v30, 7  ;;  %v1719_v32 = vpop.f32.mrb[5].mxu0 }
 0x3f8   :  { %v276_v33 = vpop.f32.mrb[6].mxu0 }
 0x3f9   :  { %v282_v34 = vadd.f32 %v280_v31, %v2294_v6  ;;  %v1720_v35 = vpop.f32.mrb[7].mxu0 }
 0x3fb   :  { %1878 = vtanh.f32 %v282_v34  ;;  %v1607_v37 = vmul.f32 -1.442695, %v282_v34 }
 0x3fd   :  { %1880 = vpow2.f32 %v1607_v37 }
 0x405   :  { %v1879_v36 = vpop.eup %1878 }
 0x406   :  { %295 = vrot.lane.b32.xlu0 %v1879_v36, %s2143_s11 }
 0x407   :  { %v1881_v38 = vpop.eup %1880 }
 0x408   :  { %v286_v39 = vadd.f32 1.0, %v1881_v38 }
 0x40a   :  { %1882 = vrcp.f32 %v286_v39 }
 0x414   :  { %v1883_v40 = vpop.eup %1882 }
 0x415   :  { %v293_v44 = vmul.f32 %v1883_v40, %v291_v43 }
 0x478   :  { %v296_v41 = vpop.permute.xlu0 %295 }
 0x479   :  { %v298_v42 = vmul.f32 %v1883_v40, %v296_v41 }
 0x47b   :  { %300 = vrot.lane.b32.xlu1 %v298_v42, %s2152_s4 }
 0x4ed   :  { %v301_v45 = vpop.permute.xlu1 %300 }
 0x4ee   :  { %v303_v46 = vadd.f32 %v301_v45, %v293_v44 }
 0x4f0   :  { %1884 = vtanh.f32 %v303_v46  ;;  %v371_v7 = vrot.slane %v303_v46, 7 }
 0x4fa   :  { %v1885_v47 = vpop.eup %1884 }
 0x4fb   :  { %306 = vrot.lane.b32.xlu0 %v1885_v47, %s2143_s11 }
 0x56d   :  { %v307_v48 = vpop.permute.xlu0 %306 }
 0x56e   :  { %v309_v49 = vmul.f32 %v1883_v40, %v307_v48 }
 0x570   :  { %v310_v50 = vpack.c.bf16 %v309_v49, %v309_v49  ;;  %v790_v14 = vsel %vm789_vm3, %v2300_v27, %v309_v49 }
 0x572   :  { %v312_v51 = vshrl.u32 %v310_v50, 16 }
 0x574   :  { %314 = vrot.lane.b32.xlu1 %v312_v51, %s2152_s4 }
 0x5e6   :  { %v315_v52 = vpop.permute.xlu1 %314 }
 0x5e7   :  { %1726 = vmatmul.mubr.msk.bf16.vlgmr.msra.gmra.mrb[4].mxu1 %vm163_vm2, %v315_v52 }
 0x5e8   :  { %1738 = vmatpush3.bf16.msra.mxu1 %v2272_v1  ;;  %1741 = vmatprep.mubr.msk.bf16.mxu1 %vm2150_vm0, %v2149_v0 }
 0x5e9   :  { %1739 = vmatprep.subr.bf16.mxu1 %v2149_v0 }
 0x5ec   :  { %1740 = vmatpush3.bf16.msra.mxu1 %v2276_v4 }
 0x5ed   :  { %1753 = vmatprep.subr.bf16.mxu1 %v2149_v0 }
 0x6ba   :  { %v353_v53 = vpop.f32.mrb[4].mxu1 }
 0x6bb   :  { %v360_v54 = vrot.slane %v353_v53, 6  ;;  %v1727_v55 = vpop.f32.mrb[5].mxu1 }
 0x6bc   :  { %v356_v56 = vpop.f32.mrb[6].mxu1 }
 0x6bd   :  { %v362_v57 = vadd.f32 %v360_v54, %v2294_v6  ;;  %v1728_v58 = vpop.f32.mrb[7].mxu1 }
 0x6bf   :  { %1886 = vtanh.f32 %v362_v57  ;;  %v1609_v60 = vmul.f32 -1.442695, %v362_v57 }
 0x6c1   :  { %1888 = vpow2.f32 %v1609_v60 }
 0x6c9   :  { %v1887_v59 = vpop.eup %1886 }
 0x6ca   :  { %375 = vrot.lane.b32.xlu0 %v1887_v59, %s2143_s11 }
 0x6cb   :  { %v1889_v61 = vpop.eup %1888 }
 0x6cc   :  { %v366_v62 = vadd.f32 1.0, %v1889_v61 }
 0x6ce   :  { %1890 = vrcp.f32 %v366_v62 }
 0x6d8   :  { %v1891_v63 = vpop.eup %1890 }
 0x6d9   :  { %v373_v8 = vmul.f32 %v1891_v63, %v371_v7 }
 0x73c   :  { %v376_v2 = vpop.permute.xlu0 %375 }
 0x73d   :  { %v378_v3 = vmul.f32 %v1891_v63, %v376_v2 }
 0x73f   :  { %380 = vrot.lane.b32.xlu1 %v378_v3, %s2152_s4 }
 0x7b1   :  { %v381_v9 = vpop.permute.xlu1 %380 }
 0x7b2   :  { %v383_v10 = vadd.f32 %v381_v9, %v373_v8 }
 0x7b4   :  { %1892 = vtanh.f32 %v383_v10  ;;  %v450_v32 = vrot.slane %v383_v10, 7 }
 0x7be   :  { %v1893_v11 = vpop.eup %1892 }
 0x7bf   :  { %386 = vrot.lane.b32.xlu0 %v1893_v11, %s2143_s11 }
 0x831   :  { %v387_v12 = vpop.permute.xlu0 %386 }
 0x832   :  { %v389_v13 = vmul.f32 %v1891_v63, %v387_v12 }
 0x834   :  { %v390_v15 = vpack.c.bf16 %v389_v13, %v389_v13  ;;  %v792_v16 = vsel %vm791_vm4, %v790_v14, %v389_v13 }
 0x836   :  { %v392_v17 = vrot.slane %v390_v15, 1 }
 0x838   :  { %393 = vrot.lane.b32.xlu1 %v392_v17, %s2152_s4 }
 0x8aa   :  { %v394_v18 = vpop.permute.xlu1 %393 }
 0x8ab   :  { %1734 = vmatmul.mubr.msk.bf16.vlgmr.msra.gmra.mrb[8].mxu0 %vm163_vm2, %v394_v18 }
 0x8ac   :  { %1746 = vmatpush3.bf16.msra.mxu0 %v2272_v1  ;;  %1749 = vmatprep.mubr.msk.bf16.mxu0 %vm2150_vm0, %v2149_v0 }
 0x8ad   :  { %1747 = vmatprep.subr.bf16.mxu0 %v2149_v0 }
 0x8b0   :  { %1748 = vmatpush3.bf16.msra.mxu0 %v2276_v4 }
 0x8b1   :  { %1761 = vmatprep.subr.bf16.mxu0 %v2149_v0 }
 0x97e   :  { %v432_v19 = vpop.f32.mrb[8].mxu0 }
 0x97f   :  { %v439_v20 = vrot.slane %v432_v19, 5  ;;  %v1735_v21 = vpop.f32.mrb[9].mxu0 }
 0x980   :  { %v435_v22 = vpop.f32.mrb[10].mxu0 }
 0x981   :  { %v441_v23 = vadd.f32 %v439_v20, %v2294_v6  ;;  %v1736_v24 = vpop.f32.mrb[11].mxu0 }
 0x983   :  { %1894 = vtanh.f32 %v441_v23  ;;  %v1611_v26 = vmul.f32 -1.442695, %v441_v23 }
 0x985   :  { %1896 = vpow2.f32 %v1611_v26 }
 0x98d   :  { %v1895_v25 = vpop.eup %1894 }
 0x98e   :  { %454 = vrot.lane.b32.xlu0 %v1895_v25, %s2143_s11 }
 0x98f   :  { %v1897_v27 = vpop.eup %1896 }
 0x990   :  { %v445_v28 = vadd.f32 1.0, %v1897_v27 }
 0x992   :  { %1898 = vrcp.f32 %v445_v28 }
 0x99c   :  { %v1899_v29 = vpop.eup %1898 }
 0x99d   :  { %v452_v33 = vmul.f32 %v1899_v29, %v450_v32 }
 0xa00   :  { %v455_v30 = vpop.permute.xlu0 %454 }
 0xa01   :  { %v457_v31 = vmul.f32 %v1899_v29, %v455_v30 }
 0xa03   :  { %459 = vrot.lane.b32.xlu1 %v457_v31, %s2152_s4 }
 0xa75   :  { %v460_v34 = vpop.permute.xlu1 %459 }
 0xa76   :  { %v462_v35 = vadd.f32 %v460_v34, %v452_v33 }
 0xa78   :  { %1900 = vtanh.f32 %v462_v35  ;;  %v531_v57 = vrot.slane %v462_v35, 7 }
 0xa82   :  { %v1901_v36 = vpop.eup %1900 }
 0xa83   :  { %465 = vrot.lane.b32.xlu0 %v1901_v36, %s2143_s11 }
 0xaf5   :  { %v466_v37 = vpop.permute.xlu0 %465 }
 0xaf6   :  { %v468_v38 = vmul.f32 %v1899_v29, %v466_v37 }
 0xaf8   :  { %v469_v39 = vpack.c.bf16 %v468_v38, %v468_v38  ;;  %v794_v40 = vsel %vm793_vm5, %v792_v16, %v468_v38 }
 0xafa   :  { %v471_v41 = vshrl.u32 %v469_v39, 16 }
 0xafc   :  { %v473_v42 = vrot.slane %v471_v41, 1 }
 0xafe   :  { %474 = vrot.lane.b32.xlu1 %v473_v42, %s2152_s4 }
 0xb70   :  { %v475_v43 = vpop.permute.xlu1 %474 }
 0xb71   :  { %1742 = vmatmul.mubr.msk.bf16.vlgmr.msra.gmra.mrb[8].mxu1 %vm163_vm2, %v475_v43 }
 0xb72   :  { %1754 = vmatpush3.bf16.msra.mxu1 %v2272_v1  ;;  %1757 = vmatprep.mubr.msk.bf16.mxu1 %vm2150_vm0, %v2149_v0 }
 0xb73   :  { %1755 = vmatprep.subr.bf16.mxu1 %v2149_v0 }
 0xb76   :  { %1756 = vmatpush3.bf16.msra.mxu1 %v2276_v4 }
 0xb77   :  { %1769 = vmatprep.subr.bf16.mxu1 %v2149_v0 }
 0xc44   :  { %v513_v44 = vpop.f32.mrb[8].mxu1 }
 0xc45   :  { %v520_v45 = vrot.slane %v513_v44, 4  ;;  %v1743_v46 = vpop.f32.mrb[9].mxu1 }
 0xc46   :  { %v516_v47 = vpop.f32.mrb[10].mxu1 }
 0xc47   :  { %v522_v48 = vadd.f32 %v520_v45, %v2294_v6  ;;  %v1744_v49 = vpop.f32.mrb[11].mxu1 }
 0xc49   :  { %1902 = vtanh.f32 %v522_v48  ;;  %v1613_v51 = vmul.f32 -1.442695, %v522_v48 }
 0xc4b   :  { %1904 = vpow2.f32 %v1613_v51 }
 0xc53   :  { %v1903_v50 = vpop.eup %1902 }
 0xc54   :  { %535 = vrot.lane.b32.xlu0 %v1903_v50, %s2143_s11 }
 0xc55   :  { %v1905_v52 = vpop.eup %1904 }
 0xc56   :  { %v526_v53 = vadd.f32 1.0, %v1905_v52 }
 0xc58   :  { %1906 = vrcp.f32 %v526_v53 }
 0xc62   :  { %v1907_v54 = vpop.eup %1906 }
 0xc63   :  { %v533_v58 = vmul.f32 %v1907_v54, %v531_v57 }
 0xcc6   :  { %v536_v55 = vpop.permute.xlu0 %535 }
 0xcc7   :  { %v538_v56 = vmul.f32 %v1907_v54, %v536_v55 }
 0xcc9   :  { %540 = vrot.lane.b32.xlu1 %v538_v56, %s2152_s4 }
 0xd3b   :  { %v541_v59 = vpop.permute.xlu1 %540 }
 0xd3c   :  { %v543_v60 = vadd.f32 %v541_v59, %v533_v58 }
 0xd3e   :  { %1908 = vtanh.f32 %v543_v60  ;;  %v610_v20 = vrot.slane %v543_v60, 7 }
 0xd48   :  { %v1909_v61 = vpop.eup %1908 }
 0xd49   :  { %546 = vrot.lane.b32.xlu0 %v1909_v61, %s2143_s11 }
 0xdbb   :  { %v547_v62 = vpop.permute.xlu0 %546 }
 0xdbc   :  { %v549_v63 = vmul.f32 %v1907_v54, %v547_v62 }
 0xdbe   :  { %v550_v2 = vpack.c.bf16 %v549_v63, %v549_v63  ;;  %v796_v3 = vsel %vm795_vm6, %v794_v40, %v549_v63 }
 0xdc0   :  { %v552_v7 = vrot.slane %v550_v2, 2 }
 0xdc2   :  { %553 = vrot.lane.b32.xlu1 %v552_v7, %s2152_s4 }
 0xe34   :  { %v554_v8 = vpop.permute.xlu1 %553 }
 0xe35   :  { %1750 = vmatmul.mubr.msk.bf16.vlgmr.msra.gmra.mrb[12].mxu0 %vm163_vm2, %v554_v8 }
 0xe36   :  { %1762 = vmatpush3.bf16.msra.mxu0 %v2272_v1  ;;  %1765 = vmatprep.mubr.msk.bf16.mxu0 %vm2150_vm0, %v2149_v0 }
 0xe37   :  { %1763 = vmatprep.subr.bf16.mxu0 %v2149_v0 }
 0xe3a   :  { %1764 = vmatpush3.bf16.msra.mxu0 %v2276_v4 }
 0xe3b   :  { %1777 = vmatprep.subr.bf16.mxu0 %v2149_v0 }
 0xf08   :  { %v592_v9 = vpop.f32.mrb[12].mxu0 }
 0xf09   :  { %v599_v10 = vrot.slane %v592_v9, 3  ;;  %v1751_v11 = vpop.f32.mrb[13].mxu0 }
 0xf0a   :  { %v595_v12 = vpop.f32.mrb[14].mxu0 }
 0xf0b   :  { %v601_v13 = vadd.f32 %v599_v10, %v2294_v6  ;;  %v1752_v14 = vpop.f32.mrb[15].mxu0 }
 0xf0c   :  { %v1865_v14 = vld [vmem:[#allocation7] sm:$0xff]  }
 0xf0d   :  { %1910 = vtanh.f32 %v601_v13  ;;  %v1615_v1 = vmul.f32 -1.442695, %v601_v13 }
 0xf0f   :  { %1912 = vpow2.f32 %v1615_v1  ;;  %v1867_v1 = vld [vmem:[#allocation7 + $0x8] sm:$0xff]  }
 0xf17   :  { %v1911_v15 = vpop.eup %1910 }
 0xf18   :  { %614 = vrot.lane.b32.xlu0 %v1911_v15, %s2143_s11  ;;  %v2384_v15 = vld [vmem:[#allocation10 + $0x8] sm:$0xff]  }
 0xf19   :  { %v1913_v16 = vpop.eup %1912 }
 0xf1a   :  { %v605_v17 = vadd.f32 1.0, %v1913_v16 }
 0xf1c   :  { %1914 = vrcp.f32 %v605_v17 }
 0xf26   :  { %v1915_v18 = vpop.eup %1914 }
 0xf27   :  { %v612_v21 = vmul.f32 %v1915_v18, %v610_v20 }
 0xf8a   :  { %v615_v4 = vpop.permute.xlu0 %614 }
 0xf8b   :  { %v617_v19 = vmul.f32 %v1915_v18, %v615_v4 }
 0xf8d   :  { %619 = vrot.lane.b32.xlu1 %v617_v19, %s2152_s4 }
 0xfff   :  { %v620_v22 = vpop.permute.xlu1 %619 }
0x1000   :  { %v622_v23 = vadd.f32 %v620_v22, %v612_v21 }
0x1002   :  { %1916 = vtanh.f32 %v622_v23  ;;  %v691_v45 = vrot.slane %v622_v23, 7 }
0x100c   :  { %v1917_v24 = vpop.eup %1916 }
0x100d   :  { %625 = vrot.lane.b32.xlu0 %v1917_v24, %s2143_s11 }
0x107f   :  { %v626_v25 = vpop.permute.xlu0 %625 }
0x1080   :  { %v628_v26 = vmul.f32 %v1915_v18, %v626_v25 }
0x1082   :  { %v629_v27 = vpack.c.bf16 %v628_v26, %v628_v26  ;;  %v798_v28 = vsel %vm797_vm7, %v796_v3, %v628_v26 }
0x1084   :  { %v631_v29 = vshrl.u32 %v629_v27, 16 }
0x1086   :  { %v633_v30 = vrot.slane %v631_v29, 2 }
0x1088   :  { %634 = vrot.lane.b32.xlu1 %v633_v30, %s2152_s4 }
0x10fa   :  { %v635_v31 = vpop.permute.xlu1 %634 }
0x10fb   :  { %1758 = vmatmul.mubr.msk.bf16.vlgmr.msra.gmra.mrb[12].mxu1 %vm163_vm2, %v635_v31 }
0x10fc   :  { %1773 = vmatprep.mubr.msk.bf16.mxu1 %vm2150_vm0, %v2149_v0  ;;  %1770 = vmatpush3.bf16.msra.mxu1 %v1865_v14 }
0x10fd   :  { %1771 = vmatprep.subr.bf16.mxu1 %v2149_v0 }
0x1100   :  { %1772 = vmatpush3.bf16.msra.mxu1 %v1867_v1 }
0x1101   :  { %1785 = vmatprep.subr.bf16.mxu1 %v2149_v0 }
0x11ce   :  { %v673_v32 = vpop.f32.mrb[12].mxu1 }
0x11cf   :  { %v680_v33 = vrot.slane %v673_v32, 2  ;;  %v1759_v34 = vpop.f32.mrb[13].mxu1 }
0x11d0   :  { %v676_v35 = vpop.f32.mrb[14].mxu1 }
0x11d1   :  { %v682_v36 = vadd.f32 %v680_v33, %v2294_v6  ;;  %v1760_v37 = vpop.f32.mrb[15].mxu1 }
0x11d3   :  { %1918 = vtanh.f32 %v682_v36  ;;  %v1617_v39 = vmul.f32 -1.442695, %v682_v36 }
0x11d5   :  { %1920 = vpow2.f32 %v1617_v39 }
0x11dd   :  { %v1919_v38 = vpop.eup %1918 }
0x11de   :  { %695 = vrot.lane.b32.xlu0 %v1919_v38, %s2143_s11 }
0x11df   :  { %v1921_v40 = vpop.eup %1920 }
0x11e0   :  { %v686_v41 = vadd.f32 1.0, %v1921_v40 }
0x11e2   :  { %1922 = vrcp.f32 %v686_v41 }
0x11ec   :  { %v1923_v42 = vpop.eup %1922 }
0x11ed   :  { %v693_v46 = vmul.f32 %v1923_v42, %v691_v45 }
0x1250   :  { %v696_v43 = vpop.permute.xlu0 %695 }
0x1251   :  { %v698_v44 = vmul.f32 %v1923_v42, %v696_v43 }
0x1253   :  { %700 = vrot.lane.b32.xlu1 %v698_v44, %s2152_s4 }
0x12c5   :  { %v701_v47 = vpop.permute.xlu1 %700 }
0x12c6   :  { %v703_v48 = vadd.f32 %v701_v47, %v693_v46 }
0x12c8   :  { %1924 = vtanh.f32 %v703_v48  ;;  %v770_v10 = vrot.slane %v703_v48, 7 }
0x12d2   :  { %v1925_v49 = vpop.eup %1924 }
0x12d3   :  { %706 = vrot.lane.b32.xlu0 %v1925_v49, %s2143_s11 }
0x1345   :  { %v707_v50 = vpop.permute.xlu0 %706 }
0x1346   :  { %v709_v51 = vmul.f32 %v1923_v42, %v707_v50 }
0x1348   :  { %v710_v52 = vpack.c.bf16 %v709_v51, %v709_v51  ;;  %v800_v53 = vsel %vm799_vm8, %v798_v28, %v709_v51 }
0x134a   :  { %v712_v54 = vrot.slane %v710_v52, 3 }
0x134c   :  { %713 = vrot.lane.b32.xlu1 %v712_v54, %s2152_s4 }
0x13be   :  { %v714_v55 = vpop.permute.xlu1 %713 }
0x13bf   :  { %1766 = vmatmul.mubr.msk.bf16.vlgmr.msra.gmra.mrb[16].mxu0 %vm163_vm2, %v714_v55 }
0x13c0   :  { %1781 = vmatprep.mubr.msk.bf16.mxu0 %vm2150_vm0, %v2149_v0 }
0x1492   :  { %v752_v56 = vpop.f32.mrb[16].mxu0 }
0x1493   :  { %v759_v57 = vrot.slane %v752_v56, 1  ;;  %v1767_v58 = vpop.f32.mrb[17].mxu0 }
0x1494   :  { %v755_v59 = vpop.f32.mrb[18].mxu0 }
0x1495   :  { %v761_v60 = vadd.f32 %v759_v57, %v2294_v6  ;;  %v1768_v61 = vpop.f32.mrb[19].mxu0  ;;  %v2381_v6 = vld [vmem:[#allocation10] sm:$0xff]  }
0x1496   :  { %1778 = vmatpush3.bf16.msra.mxu0 %v2381_v6 }
0x1497   :  { %1926 = vtanh.f32 %v761_v60  ;;  %v1619_v63 = vmul.f32 -1.442695, %v761_v60  ;;  %1779 = vmatprep.subr.bf16.mxu0 %v2149_v0 }
0x1499   :  { %1928 = vpow2.f32 %v1619_v63 }
0x149a   :  { %1780 = vmatpush3.bf16.msra.mxu0 %v2384_v15 }
0x149b   :  { %1793 = vmatprep.subr.bf16.mxu0 %v2149_v0 }
0x149d   :  { %1782 = vmatmul.mubr.bf16.vlgmr.msra.gmra.mrb[20].mxu0 %v2151_v5 }
0x149e   :  { %1794 = vmatpush3.bf16.msra.mxu0 %v2381_v6  ;;  %1797 = vmatprep.mubr.msk.bf16.mxu0 %vm2150_vm0, %v2149_v0 }
0x149f   :  { %1795 = vmatprep.subr.bf16.mxu0 %v2149_v0 }
0x14a1   :  { %v1927_v62 = vpop.eup %1926 }
0x14a2   :  { %774 = vrot.lane.b32.xlu0 %v1927_v62, %s2143_s11  ;;  %1796 = vmatpush3.bf16.msra.mxu0 %v2384_v15 }
0x14a3   :  { %v1929_v2 = vpop.eup %1928  ;;  %1809 = vmatprep.subr.bf16.mxu0 %v2149_v0 }
0x14a4   :  { %v765_v3 = vadd.f32 1.0, %v1929_v2 }
0x14a6   :  { %1930 = vrcp.f32 %v765_v3 }
0x14b0   :  { %v1931_v7 = vpop.eup %1930 }
0x14b1   :  { %v772_v11 = vmul.f32 %v1931_v7, %v770_v10 }
0x1514   :  { %v775_v8 = vpop.permute.xlu0 %774 }
0x1515   :  { %v777_v9 = vmul.f32 %v1931_v7, %v775_v8 }
0x1517   :  { %779 = vrot.lane.b32.xlu1 %v777_v9, %s2152_s4 }
0x1570   :  { %v916_v20 = vpop.f32.mrb[20].mxu0 }
0x1571   :  { %v1783_v5 = vpop.f32.mrb[21].mxu0 }
0x1572   :  { %v919_v21 = vpop.f32.mrb[22].mxu0 }
0x1573   :  { %v1784_v22 = vpop.f32.mrb[23].mxu0 }
0x1589   :  { %v780_v12 = vpop.permute.xlu1 %779 }
0x158a   :  { %v782_v13 = vadd.f32 %v780_v12, %v772_v11 }
0x158c   :  { %1932 = vtanh.f32 %v782_v13 }
0x1596   :  { %v1933_v16 = vpop.eup %1932 }
0x1597   :  { %785 = vrot.lane.b32.xlu0 %v1933_v16, %s2143_s11 }
0x1609   :  { %v786_v17 = vpop.permute.xlu0 %785 }
0x160a   :  { %v788_v18 = vmul.f32 %v1931_v7, %v786_v17 }
0x160c   :  { %v802_v4 = vsel %vm801_vm9, %v800_v53, %v788_v18 }
0x160d   :  { %v803_v19 = vpack.c.bf16 %v802_v4, %v802_v4 }
0x160f   :  { %813 = vrot.lane.b32.xlu1 %v803_v19, %s2152_s4 }
0x1681   :  { %v814_v23 = vpop.permute.xlu1 %813 }
0x1682   :  { %1774 = vmatmul.mubr.msk.bf16.vlgmr.msra.gmra.mrb[16].mxu1 %vm163_vm2, %v814_v23 }
0x1683   :  { %1786 = vmatpush3.bf16.msra.mxu1 %v2381_v6  ;;  %1789 = vmatprep.mubr.msk.bf16.mxu1 %vm2150_vm0, %v2149_v0 }
0x1684   :  { %1787 = vmatprep.subr.bf16.mxu1 %v2149_v0 }
0x1687   :  { %1788 = vmatpush3.bf16.msra.mxu1 %v2384_v15 }
0x1688   :  { %1801 = vmatprep.subr.bf16.mxu1 %v2149_v0 }
0x1755   :  { %v2407_v24 = vpop.f32.mrb[16].mxu1 }
0x1756   :  { %v1775_v25 = vpop.f32.mrb[17].mxu1  ;;  %v922_v26 = vadd.f32 %v916_v20, %v2407_v24 }
0x1757   :  { %v867_v27 = vpop.f32.mrb[18].mxu1 }
0x1758   :  { %v1776_v28 = vpop.f32.mrb[19].mxu1  ;;  %1934 = vtanh.f32 %v922_v26  ;;  %v1625_v30 = vmul.f32 -1.442695, %v922_v26 }
0x175a   :  { %1936 = vpow2.f32 %v1625_v30 }
0x1762   :  { %v1935_v29 = vpop.eup %1934 }
0x1763   :  { %932 = vrot.lane.b32.xlu0 %v1935_v29, %s2143_s11 }
0x1764   :  { %v1937_v31 = vpop.eup %1936 }
0x1765   :  { %v926_v32 = vadd.f32 1.0, %v1937_v31 }
0x1767   :  { %1938 = vrcp.f32 %v926_v32 }
0x1771   :  { %v1939_v33 = vpop.eup %1938 }
0x1772   :  { %v930_v36 = vmul.f32 0.0, %v1939_v33 }
0x17d5   :  { %v933_v34 = vpop.permute.xlu0 %932 }
0x17d6   :  { %v935_v35 = vmul.f32 %v1939_v33, %v933_v34 }
0x17d8   :  { %937 = vrot.lane.b32.xlu1 %v935_v35, %s2152_s4 }
0x184a   :  { %v938_v37 = vpop.permute.xlu1 %937 }
0x184b   :  { %v940_v38 = vadd.f32 %v938_v37, %v930_v36 }
0x184d   :  { %1940 = vtanh.f32 %v940_v38  ;;  %v1006_v57 = vrot.slane %v940_v38, 7 }
0x1857   :  { %v1941_v39 = vpop.eup %1940 }
0x1858   :  { %943 = vrot.lane.b32.xlu0 %v1941_v39, %s2143_s11 }
0x18ca   :  { %v944_v40 = vpop.permute.xlu0 %943 }
0x18cb   :  { %v946_v41 = vmul.f32 %v1939_v33, %v944_v40 }
0x18cd   :  { %v947_v42 = vpack.c.bf16 %v946_v41, %v946_v41 }
0x18cf   :  { %949 = vrot.lane.b32.xlu1 %v947_v42, %s2152_s4 }
0x1941   :  { %v950_v43 = vpop.permute.xlu1 %949 }
0x1942   :  { %1790 = vmatmul.mubr.msk.bf16.vlgmr.msra.gmra.mrb[20].mxu1 %vm163_vm2, %v950_v43 }
0x1943   :  { %1802 = vmatpush3.bf16.msra.mxu1 %v2381_v6  ;;  %1805 = vmatprep.mubr.msk.bf16.mxu1 %vm2150_vm0, %v2149_v0 }
0x1944   :  { %1803 = vmatprep.subr.bf16.mxu1 %v2149_v0 }
0x1947   :  { %1804 = vmatpush3.bf16.msra.mxu1 %v2384_v15 }
0x1948   :  { %1817 = vmatprep.subr.bf16.mxu1 %v2149_v0 }
0x1a15   :  { %v988_v44 = vpop.f32.mrb[20].mxu1 }
0x1a16   :  { %v995_v45 = vrot.slane %v988_v44, 7  ;;  %v1791_v46 = vpop.f32.mrb[21].mxu1 }
0x1a17   :  { %v991_v47 = vpop.f32.mrb[22].mxu1 }
0x1a18   :  { %v997_v48 = vadd.f32 %v995_v45, %v2407_v24  ;;  %v1792_v49 = vpop.f32.mrb[23].mxu1 }
0x1a1a   :  { %1942 = vtanh.f32 %v997_v48  ;;  %v1627_v51 = vmul.f32 -1.442695, %v997_v48 }
0x1a1c   :  { %1944 = vpow2.f32 %v1627_v51 }
0x1a24   :  { %v1943_v50 = vpop.eup %1942 }
0x1a25   :  { %1010 = vrot.lane.b32.xlu0 %v1943_v50, %s2143_s11 }
0x1a26   :  { %v1945_v52 = vpop.eup %1944 }
0x1a27   :  { %v1001_v53 = vadd.f32 1.0, %v1945_v52 }
0x1a29   :  { %1946 = vrcp.f32 %v1001_v53 }
0x1a33   :  { %v1947_v54 = vpop.eup %1946 }
0x1a34   :  { %v1008_v58 = vmul.f32 %v1947_v54, %v1006_v57 }
0x1a97   :  { %v1011_v55 = vpop.permute.xlu0 %1010 }
0x1a98   :  { %v1013_v56 = vmul.f32 %v1947_v54, %v1011_v55 }
0x1a9a   :  { %1015 = vrot.lane.b32.xlu1 %v1013_v56, %s2152_s4 }
0x1b0c   :  { %v1016_v59 = vpop.permute.xlu1 %1015 }
0x1b0d   :  { %v1018_v60 = vadd.f32 %v1016_v59, %v1008_v58 }
0x1b0f   :  { %1948 = vtanh.f32 %v1018_v60  ;;  %v1086_v20 = vrot.slane %v1018_v60, 7 }
0x1b19   :  { %v1949_v61 = vpop.eup %1948 }
0x1b1a   :  { %1021 = vrot.lane.b32.xlu0 %v1949_v61, %s2143_s11 }
0x1b8c   :  { %v1022_v62 = vpop.permute.xlu0 %1021 }
0x1b8d   :  { %v1024_v63 = vmul.f32 %v1947_v54, %v1022_v62 }
0x1b8f   :  { %v1025_v2 = vpack.c.bf16 %v1024_v63, %v1024_v63 }
0x1b91   :  { %v1027_v3 = vshrl.u32 %v1025_v2, 16 }
0x1b93   :  { %1029 = vrot.lane.b32.xlu1 %v1027_v3, %s2152_s4 }
0x1c05   :  { %v1030_v7 = vpop.permute.xlu1 %1029 }
0x1c06   :  { %1798 = vmatmul.mubr.msk.bf16.vlgmr.msra.gmra.mrb[24].mxu0 %vm163_vm2, %v1030_v7 }
0x1c07   :  { %1810 = vmatpush3.bf16.msra.mxu0 %v2381_v6  ;;  %1813 = vmatprep.mubr.msk.bf16.mxu0 %vm2150_vm0, %v2149_v0 }
0x1c08   :  { %1811 = vmatprep.subr.bf16.mxu0 %v2149_v0 }
0x1c0b   :  { %1812 = vmatpush3.bf16.msra.mxu0 %v2384_v15 }
0x1c0c   :  { %1825 = vmatprep.subr.bf16.mxu0 %v2149_v0 }
0x1cd9   :  { %v1068_v8 = vpop.f32.mrb[24].mxu0 }
0x1cda   :  { %v1075_v9 = vrot.slane %v1068_v8, 6  ;;  %v1799_v10 = vpop.f32.mrb[25].mxu0 }
0x1cdb   :  { %v1071_v11 = vpop.f32.mrb[26].mxu0 }
0x1cdc   :  { %v1077_v12 = vadd.f32 %v1075_v9, %v2407_v24  ;;  %v1800_v13 = vpop.f32.mrb[27].mxu0 }
0x1cde   :  { %1950 = vtanh.f32 %v1077_v12  ;;  %v1629_v1 = vmul.f32 -1.442695, %v1077_v12 }
0x1ce0   :  { %1952 = vpow2.f32 %v1629_v1 }
0x1ce8   :  { %v1951_v14 = vpop.eup %1950 }
0x1ce9   :  { %1090 = vrot.lane.b32.xlu0 %v1951_v14, %s2143_s11 }
0x1cea   :  { %v1953_v16 = vpop.eup %1952 }
0x1ceb   :  { %v1081_v17 = vadd.f32 1.0, %v1953_v16 }
0x1ced   :  { %1954 = vrcp.f32 %v1081_v17 }
0x1cf7   :  { %v1955_v18 = vpop.eup %1954 }
0x1cf8   :  { %v1088_v5 = vmul.f32 %v1955_v18, %v1086_v20 }
0x1d5b   :  { %v1091_v4 = vpop.permute.xlu0 %1090 }
0x1d5c   :  { %v1093_v19 = vmul.f32 %v1955_v18, %v1091_v4 }
0x1d5e   :  { %1095 = vrot.lane.b32.xlu1 %v1093_v19, %s2152_s4 }
0x1dd0   :  { %v1096_v21 = vpop.permute.xlu1 %1095 }
0x1dd1   :  { %v1098_v22 = vadd.f32 %v1096_v21, %v1088_v5 }
0x1dd3   :  { %1956 = vtanh.f32 %v1098_v22  ;;  %v1165_v43 = vrot.slane %v1098_v22, 7 }
0x1ddd   :  { %v1957_v23 = vpop.eup %1956 }
0x1dde   :  { %1101 = vrot.lane.b32.xlu0 %v1957_v23, %s2143_s11 }
0x1e50   :  { %v1102_v25 = vpop.permute.xlu0 %1101 }
0x1e51   :  { %v1104_v26 = vmul.f32 %v1955_v18, %v1102_v25 }
0x1e53   :  { %v1105_v27 = vpack.c.bf16 %v1104_v26, %v1104_v26 }
0x1e55   :  { %v1107_v28 = vrot.slane %v1105_v27, 1 }
0x1e57   :  { %1108 = vrot.lane.b32.xlu1 %v1107_v28, %s2152_s4 }
0x1ec9   :  { %v1109_v29 = vpop.permute.xlu1 %1108 }
0x1eca   :  { %1806 = vmatmul.mubr.msk.bf16.vlgmr.msra.gmra.mrb[24].mxu1 %vm163_vm2, %v1109_v29 }
0x1ecb   :  { %1818 = vmatpush3.bf16.msra.mxu1 %v2381_v6  ;;  %1821 = vmatprep.mubr.msk.bf16.mxu1 %vm2150_vm0, %v2149_v0 }
0x1ecc   :  { %1819 = vmatprep.subr.bf16.mxu1 %v2149_v0 }
0x1ecf   :  { %1820 = vmatpush3.bf16.msra.mxu1 %v2384_v15 }
0x1ed0   :  { %1833 = vmatprep.subr.bf16.mxu1 %v2149_v0 }
0x1f9d   :  { %v1147_v30 = vpop.f32.mrb[24].mxu1 }
0x1f9e   :  { %v1154_v31 = vrot.slane %v1147_v30, 5  ;;  %v1807_v32 = vpop.f32.mrb[25].mxu1 }
0x1f9f   :  { %v1150_v33 = vpop.f32.mrb[26].mxu1 }
0x1fa0   :  { %v1156_v34 = vadd.f32 %v1154_v31, %v2407_v24  ;;  %v1808_v35 = vpop.f32.mrb[27].mxu1 }
0x1fa2   :  { %1958 = vtanh.f32 %v1156_v34  ;;  %v1631_v37 = vmul.f32 -1.442695, %v1156_v34 }
0x1fa4   :  { %1960 = vpow2.f32 %v1631_v37 }
0x1fac   :  { %v1959_v36 = vpop.eup %1958 }
0x1fad   :  { %1169 = vrot.lane.b32.xlu0 %v1959_v36, %s2143_s11 }
0x1fae   :  { %v1961_v38 = vpop.eup %1960 }
0x1faf   :  { %v1160_v39 = vadd.f32 1.0, %v1961_v38 }
0x1fb1   :  { %1962 = vrcp.f32 %v1160_v39 }
0x1fbb   :  { %v1963_v40 = vpop.eup %1962 }
0x1fbc   :  { %v1167_v44 = vmul.f32 %v1963_v40, %v1165_v43 }
0x201f   :  { %v1170_v41 = vpop.permute.xlu0 %1169 }
0x2020   :  { %v1172_v42 = vmul.f32 %v1963_v40, %v1170_v41 }
0x2022   :  { %1174 = vrot.lane.b32.xlu1 %v1172_v42, %s2152_s4 }
0x2094   :  { %v1175_v45 = vpop.permute.xlu1 %1174 }
0x2095   :  { %v1177_v46 = vadd.f32 %v1175_v45, %v1167_v44 }
0x2097   :  { %1964 = vtanh.f32 %v1177_v46  ;;  %v1246_v8 = vrot.slane %v1177_v46, 7 }
0x20a1   :  { %v1965_v47 = vpop.eup %1964 }
0x20a2   :  { %1180 = vrot.lane.b32.xlu0 %v1965_v47, %s2143_s11 }
0x2114   :  { %v1181_v48 = vpop.permute.xlu0 %1180 }
0x2115   :  { %v1183_v49 = vmul.f32 %v1963_v40, %v1181_v48 }
0x2117   :  { %v1184_v50 = vpack.c.bf16 %v1183_v49, %v1183_v49 }
0x2119   :  { %v1186_v51 = vshrl.u32 %v1184_v50, 16 }
0x211b   :  { %v1188_v52 = vrot.slane %v1186_v51, 1 }
0x211d   :  { %1189 = vrot.lane.b32.xlu1 %v1188_v52, %s2152_s4 }
0x218f   :  { %v1190_v53 = vpop.permute.xlu1 %1189 }
0x2190   :  { %1814 = vmatmul.mubr.msk.bf16.vlgmr.msra.gmra.mrb[28].mxu0 %vm163_vm2, %v1190_v53 }
0x2191   :  { %1826 = vmatpush3.bf16.msra.mxu0 %v2381_v6  ;;  %1829 = vmatprep.mubr.msk.bf16.mxu0 %vm2150_vm0, %v2149_v0 }
0x2192   :  { %1827 = vmatprep.subr.bf16.mxu0 %v2149_v0 }
0x2195   :  { %1828 = vmatpush3.bf16.msra.mxu0 %v2384_v15 }
0x2196   :  { %1841 = vmatprep.subr.bf16.mxu0 %v2149_v0 }
0x2263   :  { %v1228_v54 = vpop.f32.mrb[28].mxu0 }
0x2264   :  { %v1235_v55 = vrot.slane %v1228_v54, 4  ;;  %v1815_v56 = vpop.f32.mrb[29].mxu0 }
0x2265   :  { %v1231_v57 = vpop.f32.mrb[30].mxu0 }
0x2266   :  { %v1237_v58 = vadd.f32 %v1235_v55, %v2407_v24  ;;  %v1816_v59 = vpop.f32.mrb[31].mxu0 }
0x2268   :  { %1966 = vtanh.f32 %v1237_v58  ;;  %v1633_v61 = vmul.f32 -1.442695, %v1237_v58 }
0x226a   :  { %1968 = vpow2.f32 %v1633_v61 }
0x2272   :  { %v1967_v60 = vpop.eup %1966 }
0x2273   :  { %1250 = vrot.lane.b32.xlu0 %v1967_v60, %s2143_s11 }
0x2274   :  { %v1969_v62 = vpop.eup %1968 }
0x2275   :  { %v1241_v63 = vadd.f32 1.0, %v1969_v62 }
0x2277   :  { %1970 = vrcp.f32 %v1241_v63 }
0x2281   :  { %v1971_v2 = vpop.eup %1970 }
0x2282   :  { %v1248_v9 = vmul.f32 %v1971_v2, %v1246_v8 }
0x22e5   :  { %v1251_v3 = vpop.permute.xlu0 %1250 }
0x22e6   :  { %v1253_v7 = vmul.f32 %v1971_v2, %v1251_v3 }
0x22e8   :  { %1255 = vrot.lane.b32.xlu1 %v1253_v7, %s2152_s4 }
0x235a   :  { %v1256_v10 = vpop.permute.xlu1 %1255 }
0x235b   :  { %v1258_v11 = vadd.f32 %v1256_v10, %v1248_v9 }
0x235d   :  { %1972 = vtanh.f32 %v1258_v11 }
0x2367   :  { %v1973_v12 = vpop.eup %1972 }
0x2368   :  { %1261 = vrot.lane.b32.xlu0 %v1973_v12, %s2143_s11 }
0x23da   :  { %v1262_v13 = vpop.permute.xlu0 %1261 }
0x23db   :  { %v1264_v14 = vmul.f32 %v1971_v2, %v1262_v13 }
0x23dd   :  { %v1265_v1 = vpack.c.bf16 %v1264_v14, %v1264_v14 }
0x23df   :  { %v1267_v16 = vrot.slane %v1265_v1, 2 }
0x23e1   :  { %1268 = vrot.lane.b32.xlu1 %v1267_v16, %s2152_s4 }
0x2453   :  { %v1269_v17 = vpop.permute.xlu1 %1268 }
0x2454   :  { %1822 = vmatmul.mubr.msk.bf16.vlgmr.msra.gmra.mrb[28].mxu1 %vm163_vm2, %v1269_v17 }
0x2455   :  { %1834 = vmatpush3.bf16.msra.mxu1 %v2381_v6  ;;  %1837 = vmatprep.mubr.msk.bf16.mxu1 %vm2150_vm0, %v2149_v0 }
0x2456   :  { %1835 = vmatprep.subr.bf16.mxu1 %v2149_v0 }
0x2459   :  { %1836 = vmatpush3.bf16.msra.mxu1 %v2384_v15  ;;  %v1325_v15 = vrot.slane %v1258_v11, 7 }
0x2527   :  { %v1307_v18 = vpop.f32.mrb[28].mxu1 }
0x2528   :  { %v1314_v4 = vrot.slane %v1307_v18, 3  ;;  %v1823_v19 = vpop.f32.mrb[29].mxu1 }
0x2529   :  { %v1310_v20 = vpop.f32.mrb[30].mxu1  ;;  %v1869_v19 = vld [vmem:[%s2517_s5 + $0x8] sm:$0xff]  }
0x252a   :  { %v1316_v5 = vadd.f32 %v1314_v4, %v2407_v24  ;;  %v1824_v21 = vpop.f32.mrb[31].mxu1 }
0x252c   :  { %1974 = vtanh.f32 %v1316_v5  ;;  %v1635_v23 = vmul.f32 -1.442695, %v1316_v5 }
0x252e   :  { %1976 = vpow2.f32 %v1635_v23 }
0x2536   :  { %v1975_v22 = vpop.eup %1974 }
0x2537   :  { %1329 = vrot.lane.b32.xlu0 %v1975_v22, %s2143_s11 }
0x2538   :  { %v1977_v6 = vpop.eup %1976 }
0x2539   :  { %v1320_v25 = vadd.f32 1.0, %v1977_v6 }
0x253b   :  { %1978 = vrcp.f32 %v1320_v25 }
0x2545   :  { %v1979_v26 = vpop.eup %1978 }
0x2546   :  { %v1327_v29 = vmul.f32 %v1979_v26, %v1325_v15 }
0x25a9   :  { %v1330_v27 = vpop.permute.xlu0 %1329 }
0x25aa   :  { %v1332_v28 = vmul.f32 %v1979_v26, %v1330_v27 }
0x25ac   :  { %1334 = vrot.lane.b32.xlu1 %v1332_v28, %s2152_s4 }
0x261e   :  { %v1335_v30 = vpop.permute.xlu1 %1334 }
0x261f   :  { %v1337_v31 = vadd.f32 %v1335_v30, %v1327_v29 }
0x2621   :  { %1980 = vtanh.f32 %v1337_v31  ;;  %v1406_v52 = vrot.slane %v1337_v31, 7 }
0x262b   :  { %v1981_v32 = vpop.eup %1980 }
0x262c   :  { %1340 = vrot.lane.b32.xlu0 %v1981_v32, %s2143_s11 }
0x269e   :  { %v1341_v33 = vpop.permute.xlu0 %1340 }
0x269f   :  { %v1343_v34 = vmul.f32 %v1979_v26, %v1341_v33  ;;  %v1509_v26 = vld [vmem:[%s2518_s6] sm:$0x1] }
0x26a1   :  { %v1344_v35 = vpack.c.bf16 %v1343_v34, %v1343_v34 }
0x26a3   :  { %v1346_v36 = vshrl.u32 %v1344_v35, 16 }
0x26a5   :  { %v1348_v37 = vrot.slane %v1346_v36, 2 }
0x26a7   :  { %1349 = vrot.lane.b32.xlu1 %v1348_v37, %s2152_s4 }
0x2719   :  { %v1350_v38 = vpop.permute.xlu1 %1349 }
0x271a   :  { %1830 = vmatmul.mubr.msk.bf16.vlgmr.msra.gmra.mrb[32].mxu0 %vm163_vm2, %v1350_v38 }
0x271b   :  { %1845 = vmatprep.mubr.msk.bf16.mxu0 %vm2150_vm0, %v2149_v0 }
0x27ed   :  { %v1388_v39 = vpop.f32.mrb[32].mxu0 }
0x27ee   :  { %v1395_v40 = vrot.slane %v1388_v39, 2  ;;  %v1831_v41 = vpop.f32.mrb[33].mxu0 }
0x27ef   :  { %v1391_v42 = vpop.f32.mrb[34].mxu0 }
0x27f0   :  { %v1397_v43 = vadd.f32 %v1395_v40, %v2407_v24  ;;  %v1832_v44 = vpop.f32.mrb[35].mxu0 }
0x27f2   :  { %1982 = vtanh.f32 %v1397_v43  ;;  %v1637_v46 = vmul.f32 -1.442695, %v1397_v43 }
0x27f4   :  { %1984 = vpow2.f32 %v1637_v46 }
0x27fc   :  { %v1983_v45 = vpop.eup %1982 }
0x27fd   :  { %1410 = vrot.lane.b32.xlu0 %v1983_v45, %s2143_s11 }
0x27fe   :  { %v1985_v47 = vpop.eup %1984 }
0x27ff   :  { %v1401_v48 = vadd.f32 1.0, %v1985_v47 }
0x2801   :  { %1986 = vrcp.f32 %v1401_v48 }
0x280b   :  { %v1987_v49 = vpop.eup %1986 }
0x280c   :  { %v1408_v53 = vmul.f32 %v1987_v49, %v1406_v52 }
0x286f   :  { %v1411_v50 = vpop.permute.xlu0 %1410 }
0x2870   :  { %v1413_v51 = vmul.f32 %v1987_v49, %v1411_v50 }
0x2872   :  { %1415 = vrot.lane.b32.xlu1 %v1413_v51, %s2152_s4 }
0x28e4   :  { %v1416_v54 = vpop.permute.xlu1 %1415 }
0x28e5   :  { %v1418_v55 = vadd.f32 %v1416_v54, %v1408_v53 }
0x28e7   :  { %1988 = vtanh.f32 %v1418_v55  ;;  %v1485_v16 = vrot.slane %v1418_v55, 7 }
0x28f1   :  { %v1989_v56 = vpop.eup %1988 }
0x28f2   :  { %1421 = vrot.lane.b32.xlu0 %v1989_v56, %s2143_s11 }
0x2964   :  { %v1422_v57 = vpop.permute.xlu0 %1421 }
0x2965   :  { %v1424_v58 = vmul.f32 %v1987_v49, %v1422_v57 }
0x2967   :  { %v1425_v59 = vpack.c.bf16 %v1424_v58, %v1424_v58 }
0x2969   :  { %v1427_v60 = vrot.slane %v1425_v59, 3 }
0x296b   :  { %1428 = vrot.lane.b32.xlu1 %v1427_v60, %s2152_s4 }
0x29dd   :  { %v1429_v61 = vpop.permute.xlu1 %1428 }
0x29de   :  { %1838 = vmatmul.mubr.msk.bf16.vlgmr.msra.gmra.mrb[32].mxu1 %vm163_vm2, %v1429_v61 }
0x2ab1   :  { %v1467_v62 = vpop.f32.mrb[32].mxu1 }
0x2ab2   :  { %v1474_v63 = vrot.slane %v1467_v62, 1  ;;  %v1839_v2 = vpop.f32.mrb[33].mxu1 }
0x2ab3   :  { %v1470_v3 = vpop.f32.mrb[34].mxu1 }
0x2ab4   :  { %v1476_v7 = vadd.f32 %v1474_v63, %v2407_v24  ;;  %v1840_v8 = vpop.f32.mrb[35].mxu1  ;;  %v1868_v24 = vld [vmem:[%s2517_s5] sm:$0xff]   ;;  %s2153_s5 = smov [#allocation11]  }
0x2ab5   :  { %1842 = vmatpush3.bf16.msra.mxu0 %v1868_v24  ;;  %s1590_s6 = sshll.u32 %s2153_s5, 4  ;;  %s1591_s6 = int_to_ptr.vmem [resolvable:$true] %s1590_s6 }
0x2ab6   :  { %1990 = vtanh.f32 %v1476_v7  ;;  %v1639_v10 = vmul.f32 -1.442695, %v1476_v7  ;;  %1843 = vmatprep.subr.bf16.mxu0 %v2149_v0  ;;  %s2116_s21 = scalar_lea.vmem %s1591_s6, 32  ;;  %p2117_p13 = scmp.lt.s32.totalorder %s1591_s6, %s1591_s6 }
0x2ab8   :  { %1992 = vpow2.f32 %v1639_v10 }
0x2ab9   :  { %1844 = vmatpush3.bf16.msra.mxu0 %v1869_v19 }
0x2ac0   :  { %v1991_v9 = vpop.eup %1990 }
0x2ac1   :  { %1489 = vrot.lane.b32.xlu0 %v1991_v9, %s2143_s11 }
0x2ac2   :  { %v1993_v11 = vpop.eup %1992 }
0x2ac3   :  { %v1480_v12 = vadd.f32 1.0, %v1993_v11 }
0x2ac5   :  { %1994 = vrcp.f32 %v1480_v12 }
0x2acf   :  { %v1995_v13 = vpop.eup %1994 }
0x2ad0   :  { %v1487_v17 = vmul.f32 %v1995_v13, %v1485_v16 }
0x2b33   :  { %v1490_v14 = vpop.permute.xlu0 %1489 }
0x2b34   :  { %v1492_v1 = vmul.f32 %v1995_v13, %v1490_v14 }
0x2b36   :  { %1494 = vrot.lane.b32.xlu1 %v1492_v1, %s2152_s4 }
0x2ba8   :  { %v1495_v18 = vpop.permute.xlu1 %1494 }
0x2ba9   :  { %v1497_v4 = vadd.f32 %v1495_v18, %v1487_v17 }
0x2bab   :  { %1996 = vtanh.f32 %v1497_v4 }
0x2bb5   :  { %v1997_v20 = vpop.eup %1996 }
0x2bb6   :  { %1500 = vrot.lane.b32.xlu0 %v1997_v20, %s2143_s11  ;;  %s2112_s11 = scalar_lea.vmem %s1591_s6, 16 }
0x2bb7   :  { %p2113_p12 = scmp.ne.s32.totalorder %s1591_s6, %s2112_s11  ;;  %p2118_p0 = scmp.lt.s32.totalorder %s2116_s21, %s2112_s11 }
0x2bb9   :  { %p2119_p1 = por %p2118_p0, %p2117_p13 }
0x2bbb   :  { %p2120_p2 = pnand %p2119_p1, %p2113_p12 }
0x2c28   :  { %v1501_v5 = vpop.permute.xlu0 %1500 }
0x2c29   :  { %v1503_v21 = vmul.f32 %v1995_v13, %v1501_v5 }
0x2c2b   :  { %v1504_v22 = vpack.c.bf16 %v1503_v21, %v1503_v21 }
0x2c2d   :  { %v1511_v23 = vshrl.u32 %v1504_v22, 16 }
0x2c2f   :  { %v1513_v6 = vrot.slane %v1511_v23, 3 }
0x2c31   :  { %1514 = vrot.lane.b32.xlu1 %v1513_v6, %s2152_s4 }
0x2ca3   :  { %v1515_v25 = vpop.permute.xlu1 %1514 }
0x2ca4   :  { %1846 = vmatmul.mubr.msk.bf16.vlgmr.msra.gmra.mrb[36].mxu0 %vm163_vm2, %v1515_v25 }
0x2d77   :  { %v1565_v27 = vpop.f32.mrb[36].mxu0 }
0x2d78   :  { %v1566_v0 = vadd.f32 %v1565_v27, %v1509_v26  ;;  %v1847_v28 = vpop.f32.mrb[37].mxu0 }
0x2d79   :  { %v1568_v15 = vpop.f32.mrb[38].mxu0 }
0x2d7a   :  { %v1848_v29 = vpop.f32.mrb[39].mxu0  ;;  %v1571_v30 = vsel %vm789_vm3, %v1566_v0, -inf }
0x2d7b   :  { %1572 = vmax.xlane.f32.xlu0 %v1571_v30 }
0x2e08   :  { %v1573_v31 = vpop.xlane.xlu0 %1572 }
0x2e09   :  { %v1574_v32 = vsub.f32 %v1566_v0, %v1573_v31 }
0x2e0b   :  { %v1575_v33 = vmul.f32 1.442695, %v1574_v32 }
0x2e0d   :  { %1998 = vpow2.f32 %v1575_v33 }
0x2e17   :  { %v1999_v34 = vpop.eup %1998 }
0x2e18   :  { %v1577_v35 = vsel %vm789_vm3, %v1999_v34, 0.0 }
0x2e19   :  { %1578 = vadd.xlane.f32.xlu1 %v1577_v35 }
0x2ea6   :  { %v1579_v36 = vpop.xlane.xlu1 %1578 }
0x2ea7   :  { %2000 = vlog2.f32 %v1579_v36 }
0x2eb1   :  { %v2001_v37 = vpop.eup %2000 }
0x2eb2   :  { %v1581_v38 = vmul.f32 0.6931472, %v2001_v37 }
0x2eb4   :  { %v1582_v39 = vsub.f32 %v1574_v32, %v1581_v38 }
0x2eb6   :  { %1583 = vst [vmem:[#allocation11] sm:$0x1] %v1582_v39 }
0x2eb7   :  { %2123 = shalt.err (!%p2120_p2)
}
0x2eb8   :  { %s2124_s24 = scalar_lea.hbm %s2519_s7, 16 }
0x2eb9   :  { %p2125_p3 = scmp.ne.s32.totalorder %s2519_s7, %s2124_s24  ;;  %p2128_p4 = scmp.lt.u32.totalorder %s2124_s24, %s2519_s7 }
0x2ebb   :  { %p2130_p5 = pnand %p2128_p4, %p2125_p3 }
0x2ebd   :  { %2133 = shalt.err (!%p2130_p5)
}
0x2ebe   :  { %1593 = dma.vmem_to_hbm [thread:$0]  %s1591_s6, 16, %s2519_s7, [#allocation4]  }
0x2ebf   :  { %2140 = dma.done.wait [#allocation4], 16  }
0x2ec0   :  { %2141 = vsyncadd [#allocation4], 4294967280 }
0x2ec1   :  { %1597 = vsyncpa [#allocation3], 1 }
0x2ec2   :  { %1598 = vsyncpa [#allocation6], 1 }
0x2ec3   :  { %1599 = vsyncpa [#allocation9], 1 }
0x2ec4   :  { %1600 = vsyncpa [#allocation4], 1 }

</bundles_post_ra>
